<compile_context>
chip_gen: v5e
topology: v5e:2x2
jax: 0.10.0
libtpu: 0.0.40
codegen_flags: <defaults>
</compile_context>

<pallas_src>
import functools
import math

import jax
import jax.numpy as jnp
from jax import lax
from jax.experimental import pallas as pl
from jax.experimental.pallas import tpu as pltpu


# ------------------------------ small helpers ------------------------------

def _tile(dim, target, align):
    """Largest tile <= target that divides `dim` evenly and is a multiple of
    `align`, falling back to the full dimension (every block is either a
    full-extent block or (8,128)-aligned and divides its dim exactly)."""
    if dim <= target:
        return dim
    t = (target // align) * align
    while t >= align:
        if dim % t == 0:
            return t
        t -= align
    return dim


def _pad_seq(s):
    """Pad sequence length to a friendly size (e.g. 197 -> 256, 5 -> 8)."""
    a = 128 if s >= 128 else 8
    return ((s + a - 1) // a) * a


def _gelu(y):
    # TODO(synk): tanh-approximate GELU; timm nn.GELU defaults to exact erf
    # (difference ~1e-3).  Kept tanh form for robust Mosaic lowering.
    c = math.sqrt(2.0 / math.pi)
    return 0.5 * y * (1.0 + jnp.tanh(c * (y + 0.044715 * y * y * y)))


# ----------------------------- Pallas kernels -----------------------------

def _matmul_kernel(*refs, activation, has_residual):
    """Tiled matmul with K-reduction accumulator; bias (+ optional residual,
    optional GELU) fused into the finalize step."""
    if has_residual:
        x_ref, w_ref, b_ref, r_ref, o_ref, acc_ref = refs
    else:
        x_ref, w_ref, b_ref, o_ref, acc_ref = refs

    k = pl.program_id(2)
    y = jnp.dot(x_ref[...].astype(w_ref.dtype), w_ref[...],
                preferred_element_type=jnp.float32)

    @pl.when(k == 0)
    def _first():
        # direct write on the first K step: saves a zero-init pass over the tile
        acc_ref[...] = y

    @pl.when(k > 0)
    def _accum():
        acc_ref[...] += y

    @pl.when(k == pl.num_programs(2) - 1)
    def _finalize():
        out = acc_ref[...] + b_ref[...].astype(jnp.float32)
        if has_residual:
            out = out + r_ref[...].astype(jnp.float32)
        if activation == "gelu":
            out = _gelu(out)
        o_ref[...] = out.astype(o_ref.dtype)


def _ln_matmul_kernel(x_ref, g_ref, bln_ref, w_ref, b_ref, o_ref, h_ref, *,
                      activation):
    """LayerNorm (full feature dim per tile) fused with the following matmul.
    The normalized activations are computed once per row tile (j == 0) into a
    bf16 VMEM scratch and reused for every N tile."""
    @pl.when(pl.program_id(1) == 0)
    def _ln():
        x = x_ref[...].astype(jnp.float32)
        mu = jnp.mean(x, axis=-1, keepdims=True)
        var = jnp.mean(jnp.square(x - mu), axis=-1, keepdims=True)
        h = (x - mu) * lax.rsqrt(var + 1e-6)          # timm ViT LayerNorm eps
        h_ref[...] = (h * g_ref[...] + bln_ref[...]).astype(h_ref.dtype)

    y = jnp.dot(h_ref[...], w_ref[...], preferred_element_type=jnp.float32)
    y = y + b_ref[...].astype(jnp.float32)
    if activation == "gelu":
        y = _gelu(y)
    o_ref[...] = y.astype(o_ref.dtype)


def _attention_kernel(qkv_ref, o_ref, *, heads, head_dim, s_real):
    """One batch element per grid step.  q/k/v are column slices of the
    VMEM-resident (S, 3D) qkv slab; the output is written directly in the
    residual-stream (S, D) layout, so no XLA transposes are needed around the
    call.  Softmax scale is pre-folded into the q columns of qkv_w."""
    # TODO(synk): for v7x, add a head-group grid axis (hd*hg % 128 == 0) for
    #             more megacore grain and smaller live score intermediates.
    S = qkv_ref.shape[1]
    D = heads * head_dim
    need_mask = s_real < S
    if need_mask:
        key_ok = lax.broadcasted_iota(jnp.int32, (S, S), 1) < s_real

    for h in range(heads):                      # static unroll over heads
        lo = h * head_dim
        hi = lo + head_dim
        q = qkv_ref[0, :, lo:hi]
        k = qkv_ref[0, :, D + lo:D + hi]
        v = qkv_ref[0, :, 2 * D + lo:2 * D + hi]
        s = lax.dot_general(q, k, (((1,), (1,)), ((), ())),
                            preferred_element_type=jnp.float32)   # (S, S)
        if need_mask:
            s = jnp.where(key_ok, s, -1e30)     # mask padded key positions
        m = jnp.max(s, axis=-1, keepdims=True)
        p = jnp.exp(s - m)
        inv = pl.reciprocal(jnp.sum(p, axis=-1, keepdims=True), approx=True)
        p = (p * inv).astype(v.dtype)
        o = jnp.dot(p, v, preferred_element_type=jnp.float32)     # (S, hd)
        o_ref[0, :, lo:hi] = o.astype(o_ref.dtype)


# ----------------------------- Pallas wrappers -----------------------------
# TODO(synk): at ViT-L scale, set pltpu.CompilerParams(vmem_limit_bytes=...)
#             per generation (v5e scoped default 16 MiB, v6e/v7x 32 MiB,
#             v7x physical 64 MiB) when raising tile caps further; the current
#             512x512x512 bf16 tiles fit the defaults on all generations.

def pallas_linear(x, w, b, *, activation=None, residual=None, out_dtype=None):
    M, K = x.shape
    N = w.shape[1]
    out_dtype = x.dtype if out_dtype is None else out_dtype
    tm = _tile(M, 512, 16)     # bf16 packs 16 rows per sublane group
    tn = _tile(N, 512, 128)
    tk = _tile(K, 512, 128)
    grid = (M // tm, N // tn, K // tk)

    in_specs = [pl.BlockSpec((tm, tk), lambda i, j, k: (i, k)),
                pl.BlockSpec((tk, tn), lambda i, j, k: (k, j)),
                pl.BlockSpec((1, tn), lambda i, j, k: (0, j))]
    args = [x, w, b.reshape(1, N)]
    if residual is not None:
        in_specs.append(pl.BlockSpec((tm, tn), lambda i, j, k: (i, j)))
        args.append(residual)

    return pl.pallas_call(
        functools.partial(_matmul_kernel, activation=activation,
                          has_residual=residual is not None),
        out_shape=jax.ShapeDtypeStruct((M, N), out_dtype),
        grid=grid,
        in_specs=in_specs,
        out_specs=pl.BlockSpec((tm, tn), lambda i, j, k: (i, j)),
        scratch_shapes=[pltpu.VMEM((tm, tn), jnp.float32)],
        compiler_params=pltpu.CompilerParams(
            dimension_semantics=("parallel", "parallel", "arbitrary")),
    )(*args)


def pallas_ln_linear(x, g, b_ln, w, b, *, activation=None, out_dtype=None):
    """Fused LayerNorm(x) @ w + b (K = full feature dim per tile)."""
    M, K = x.shape
    N = w.shape[1]
    out_dtype = x.dtype if out_dtype is None else out_dtype
    tm = _tile(M, 512, 16)
    tn = _tile(N, 512, 128)
    grid = (M // tm, N // tn)

    return pl.pallas_call(
        functools.partial(_ln_matmul_kernel, activation=activation),
        out_shape=jax.ShapeDtypeStruct((M, N), out_dtype),
        grid=grid,
        in_specs=[pl.BlockSpec((tm, K), lambda i, j: (i, 0)),
                  pl.BlockSpec((1, K), lambda i, j: (0, 0)),
                  pl.BlockSpec((1, K), lambda i, j: (0, 0)),
                  pl.BlockSpec((K, tn), lambda i, j: (0, j)),
                  pl.BlockSpec((1, tn), lambda i, j: (0, j))],
        out_specs=pl.BlockSpec((tm, tn), lambda i, j: (i, j)),
        scratch_shapes=[pltpu.VMEM((tm, K), jnp.bfloat16)],
        compiler_params=pltpu.CompilerParams(
            # j must run sequentially per row tile so the LN scratch is valid
            dimension_semantics=("parallel", "arbitrary")),
    )(x, g.reshape(1, K), b_ln.reshape(1, K), w, b.reshape(1, N))


def pallas_attention(qkv, heads, head_dim, s_real):
    """qkv: (B, S, 3D) bf16 slab straight from the LN+QKV matmul.
    Returns (B, S, D) in residual-stream layout."""
    B, S, threeD = qkv.shape
    D = heads * head_dim
    return pl.pallas_call(
        functools.partial(_attention_kernel, heads=heads, head_dim=head_dim,
                          s_real=s_real),
        out_shape=jax.ShapeDtypeStruct((B, S, D), qkv.dtype),
        grid=(B,),
        in_specs=[pl.BlockSpec((1, S, threeD), lambda b: (b, 0, 0))],
        out_specs=pl.BlockSpec((1, S, D), lambda b: (b, 0, 0)),
        compiler_params=pltpu.CompilerParams(
            dimension_semantics=("parallel",)),
    )(qkv)


# --------------------------- parameter construction ---------------------------

def init_vit_params(key, *, in_chans, patch, img_size, dim, depth, heads,
                    mlp_ratio):
    n_patches = (img_size // patch) ** 2
    seq = n_patches + 1
    patch_dim = in_chans * patch * patch
    hidden = int(dim * mlp_ratio)
    head_dim = dim // heads
    attn_scale = 1.0 / math.sqrt(head_dim)
    # fold the softmax scale into the q output-columns of the QKV projection
    # (and, for a real checkpoint, into qkv_b's q slice as well)
    q_col_scale = jnp.concatenate(
        [jnp.full((dim,), attn_scale, jnp.float32),
         jnp.ones((2 * dim,), jnp.float32)])

    keys = jax.random.split(key, 4 + depth)
    # MXU weights stored in bf16; biases / LN params / embeddings stay f32.
    # TODO(synk): weight-BW-bound small-batch inference would benefit from fp8
    #             (v7x) / int8 (v5e, v6e) weights with per-channel scales
    #             folded into the bias finalize step.
    w_init = lambda k, shp: (0.02 * jax.random.normal(k, shp, jnp.float32)
                             ).astype(jnp.bfloat16)
    e_init = lambda k, shp: 0.02 * jax.random.normal(k, shp, jnp.float32)

    params = {
        "patch_w": w_init(keys[0], (patch_dim, dim)),
        "patch_b": jnp.zeros((dim,), jnp.float32),
        "cls_token": e_init(keys[1], (1, 1, dim)),
        "pos_embed": e_init(keys[2], (1, seq, dim)),
        "norm_g": jnp.ones((dim,), jnp.float32),
        "norm_b": jnp.zeros((dim,), jnp.float32),
        "blocks": [],
    }
    for d in range(depth):
        bk = jax.random.split(keys[4 + d], 4)
        qkv_w = 0.02 * jax.random.normal(bk[0], (dim, 3 * dim), jnp.float32)
        qkv_w = (qkv_w * q_col_scale).astype(jnp.bfloat16)
        qkv_b = jnp.zeros((3 * dim,), jnp.float32) * q_col_scale
        params["blocks"].append({
            "ln1_g": jnp.ones((dim,), jnp.float32),
            "ln1_b": jnp.zeros((dim,), jnp.float32),
            "qkv_w": qkv_w,
            "qkv_b": qkv_b,
            "proj_w": w_init(bk[1], (dim, dim)),
            "proj_b": jnp.zeros((dim,), jnp.float32),
            "ln2_g": jnp.ones((dim,), jnp.float32),
            "ln2_b": jnp.zeros((dim,), jnp.float32),
            "fc1_w": w_init(bk[2], (dim, hidden)),
            "fc1_b": jnp.zeros((hidden,), jnp.float32),
            "fc2_w": w_init(bk[3], (hidden, dim)),
            "fc2_b": jnp.zeros((dim,), jnp.float32),
        })
    return params


# ------------------------------- model forward -------------------------------

def vit_forward_features(params, img, *, patch, heads):
    """timm/RETFound ViT forward_features with global_pool=False -> CLS token."""
    B, C, Himg, Wimg = img.shape
    D = params["patch_w"].shape[1]
    hd = D // heads

    # Patch embedding: Conv2d(kernel=stride=patch) == matmul on flattened patches.
    x = img.reshape(B, C, Himg // patch, patch, Wimg // patch, patch)
    x = x.transpose(0, 2, 4, 1, 3, 5).reshape(B, -1, C * patch * patch)
    Np = x.shape[1]
    x = x.astype(jnp.bfloat16)          # cast before the call: halves input DMA
    x = pallas_linear(x.reshape(B * Np, -1), params["patch_w"],
                      params["patch_b"], out_dtype=jnp.float32)
    x = x.reshape(B, Np, D)

    cls = jnp.broadcast_to(params["cls_token"], (B, 1, D))
    x = jnp.concatenate([cls, x], axis=1) + params["pos_embed"]
    s_real = x.shape[1]
    s_pad = _pad_seq(s_real)            # 197 -> 256 at ViT-L scale, 5 -> 8 here
    if s_pad != s_real:
        # zero-pad the sequence; padded keys are masked inside attention and all
        # other ops are per-token, so padded rows never influence real tokens.
        x = jnp.pad(x, ((0, 0), (0, s_pad - s_real), (0, 0)))
    x = x.astype(jnp.bfloat16)          # activations stay bf16 through the blocks
    S = s_pad

    for blk in params["blocks"]:
        x2d = x.reshape(B * S, D)
        # --- multi-head self-attention (LayerNorm fused into the QKV matmul) ---
        qkv = pallas_ln_linear(x2d, blk["ln1_g"], blk["ln1_b"],
                               blk["qkv_w"], blk["qkv_b"])            # (B*S, 3D)
        a = pallas_attention(qkv.reshape(B, S, 3 * D), heads, hd, s_real)
        # projection matmul with bias + residual-add fused
        x2d = pallas_linear(a.reshape(B * S, D), blk["proj_w"], blk["proj_b"],
                            residual=x2d)
        # --- MLP (LayerNorm fused into fc1, residual fused into fc2) ---
        h = pallas_ln_linear(x2d, blk["ln2_g"], blk["ln2_b"],
                             blk["fc1_w"], blk["fc1_b"], activation="gelu")
        x2d = pallas_linear(h, blk["fc2_w"], blk["fc2_b"], residual=x2d)
        x = x2d.reshape(B, S, D)

    # Final LayerNorm is per-token -> apply to the CLS token only.  [B, D] is
    # too small for a profitable pallas_call (sublane under-fill + per-call
    # overhead), so it runs in plain XLA.
    cls_tok = x[:, 0].astype(jnp.float32)
    mu = jnp.mean(cls_tok, axis=-1, keepdims=True)
    var = jnp.mean(jnp.square(cls_tok - mu), axis=-1, keepdims=True)
    return ((cls_tok - mu) * lax.rsqrt(var + 1e-6)
            * params["norm_g"] + params["norm_b"])


def classification_multimodal_forward(params, f_img, o_img, *, patch, heads):
    x_fun = vit_forward_features(params["fundus"], f_img, patch=patch, heads=heads)
    x_oct = vit_forward_features(params["oct"], o_img, patch=patch, heads=heads)
    x_cat = jnp.concatenate([x_fun, x_oct], axis=1)                   # [B, 2D]
    # layer_cat: N=1 output -> lane-sparse Pallas store + per-call overhead
    # exceeds the work, so the tiny head matmul runs in plain XLA.
    out = x_cat @ params["cat_w"].astype(jnp.float32) + params["cat_b"]
    return out                                                         # [B, 1]
    # note: self.activ (ReLU) / self.activation_func (Sigmoid) are declared but
    # unused in the reference forward(), so they are intentionally not applied.


# ----------------------------------- main -----------------------------------

if __name__ == "__main__":
    # small synthetic config standing in for vit_large_patch16
    B, C, IMG, PATCH = 2, 3, 16, 8
    DIM, DEPTH, HEADS, MLP_RATIO = 32, 2, 4, 4.0

    key = jax.random.PRNGKey(0)
    k_fun, k_oct, k_cat, k_fimg, k_oimg = jax.random.split(key, 5)

    params = {
        "fundus": init_vit_params(k_fun, in_chans=C, patch=PATCH, img_size=IMG,
                                  dim=DIM, depth=DEPTH, heads=HEADS,
                                  mlp_ratio=MLP_RATIO),
        "oct": init_vit_params(k_oct, in_chans=C, patch=PATCH, img_size=IMG,
                               dim=DIM, depth=DEPTH, heads=HEADS,
                               mlp_ratio=MLP_RATIO),
        # layer_cat: Linear(2*feature_dim, 1)  (2048 -> 1 in the original)
        "cat_w": (0.02 * jax.random.normal(k_cat, (2 * DIM, 1), jnp.float32)
                  ).astype(jnp.bfloat16),
        "cat_b": jnp.zeros((1,), jnp.float32),
    }

    f_img = jax.random.normal(k_fimg, (B, C, IMG, IMG), jnp.float32)  # NCHW
    o_img = jax.random.normal(k_oimg, (B, C, IMG, IMG), jnp.float32)  # NCHW

    fwd = jax.jit(functools.partial(classification_multimodal_forward,
                                    patch=PATCH, heads=HEADS))
    out = fwd(params, f_img, o_img)
    out = jax.block_until_ready(out)

    assert out.shape == (B, 1), out.shape
    assert out.dtype == jnp.float32
    print("KERNEL_OK")
</pallas_src>

<mosaic_0001>
module attributes {stable_mosaic.version = 11 : i64} {
  func.func @_matmul_kernel(%arg0: i32, %arg1: i32, %arg2: i32, %arg3: memref<8x192xbf16, #tpu.memory_space<vmem>>, %arg4: memref<192x32xbf16, #tpu.memory_space<vmem>>, %arg5: memref<1x32xf32, #tpu.memory_space<vmem>>, %arg6: memref<8x32xf32, #tpu.memory_space<vmem>>, %arg7: memref<8x32xf32, #tpu.memory_space<vmem>>) attributes {dimension_semantics = [#tpu.dimension_semantics<parallel>, #tpu.dimension_semantics<parallel>, #tpu.dimension_semantics<arbitrary>], iteration_bounds = array<i64: 1, 1, 1>, scalar_prefetch = 0 : i64, scratch_operands = 1 : i64, tpu.core_type = #tpu.core_type<tc>, window_params = [{transform_indices = @transform_0, window_bounds = array<i64: 8, 192>}, {transform_indices = @transform_1, window_bounds = array<i64: 192, 32>}, {transform_indices = @transform_2, window_bounds = array<i64: 1, 32>}, {transform_indices = @transform_3, window_bounds = array<i64: 8, 32>}]} {
    %c0 = arith.constant 0 : index
    %c0_0 = arith.constant 0 : index
    %0 = vector.load %arg3[%c0, %c0_0] : memref<8x192xbf16, #tpu.memory_space<vmem>>, vector<8x192xbf16>
    %c0_1 = arith.constant 0 : index
    %c0_2 = arith.constant 0 : index
    %1 = vector.load %arg4[%c0_1, %c0_2] : memref<192x32xbf16, #tpu.memory_space<vmem>>, vector<192x32xbf16>
    %cst = arith.constant dense<0.000000e+00> : vector<8x32xf32>
    %2 = tpu.matmul %0, %1, %cst {dimension_numbers = #tpu.dot_dimension_numbers<[1], [0], [0], [1], [0, 0, 1, 1], [], []>} : vector<8x192xbf16>, vector<192x32xbf16>, vector<8x32xf32> -> vector<8x32xf32>
    %c0_i32 = arith.constant 0 : i32
    %3 = arith.cmpi eq, %arg2, %c0_i32 : i32
    %4 = arith.extui %3 : i1 to i32
    %c0_i32_3 = arith.constant 0 : i32
    %5 = arith.cmpi ne, %4, %c0_i32_3 : i32
    scf.if %5 {
      %c0_8 = arith.constant 0 : index
      %c0_9 = arith.constant 0 : index
      %12 = vector.load %arg7[%c0_8, %c0_9] : memref<8x32xf32, #tpu.memory_space<vmem>>, vector<8x32xf32>
      tpu.vector_store %arg7[%c0_8, %c0_9], %2 {strides = array<i32>} : memref<8x32xf32, #tpu.memory_space<vmem>>, vector<8x32xf32>,
    } else {
    }
    %c0_i32_4 = arith.constant 0 : i32
    %6 = arith.cmpi sgt, %arg2, %c0_i32_4 : i32
    %7 = arith.extui %6 : i1 to i32
    %c0_i32_5 = arith.constant 0 : i32
    %8 = arith.cmpi ne, %7, %c0_i32_5 : i32
    scf.if %8 {
      %c0_8 = arith.constant 0 : index
      %c0_9 = arith.constant 0 : index
      %12 = vector.load %arg7[%c0_8, %c0_9] : memref<8x32xf32, #tpu.memory_space<vmem>>, vector<8x32xf32>
      %13 = arith.addf %12, %2 : vector<8x32xf32>
      %c0_10 = arith.constant 0 : index
      %c0_11 = arith.constant 0 : index
      %14 = vector.load %arg7[%c0_10, %c0_11] : memref<8x32xf32, #tpu.memory_space<vmem>>, vector<8x32xf32>
      tpu.vector_store %arg7[%c0_10, %c0_11], %13 {strides = array<i32>} : memref<8x32xf32, #tpu.memory_space<vmem>>, vector<8x32xf32>,
    } else {
    }
    %c0_i32_6 = arith.constant 0 : i32
    %9 = arith.cmpi eq, %arg2, %c0_i32_6 : i32
    %10 = arith.extui %9 : i1 to i32
    %c0_i32_7 = arith.constant 0 : i32
    %11 = arith.cmpi ne, %10, %c0_i32_7 : i32
    scf.if %11 {
      %c0_8 = arith.constant 0 : index
      %c0_9 = arith.constant 0 : index
      %12 = vector.load %arg7[%c0_8, %c0_9] : memref<8x32xf32, #tpu.memory_space<vmem>>, vector<8x32xf32>
      %c0_10 = arith.constant 0 : index
      %c0_11 = arith.constant 0 : index
      %13 = vector.load %arg5[%c0_10, %c0_11] : memref<1x32xf32, #tpu.memory_space<vmem>>, vector<1x32xf32>
      %14 = vector.broadcast %13 : vector<1x32xf32> to vector<8x32xf32>
      %15 = arith.addf %12, %14 : vector<8x32xf32>
      %c0_12 = arith.constant 0 : index
      %c0_13 = arith.constant 0 : index
      %16 = vector.load %arg6[%c0_12, %c0_13] : memref<8x32xf32, #tpu.memory_space<vmem>>, vector<8x32xf32>
      tpu.vector_store %arg6[%c0_12, %c0_13], %15 {strides = array<i32>} : memref<8x32xf32, #tpu.memory_space<vmem>>, vector<8x32xf32>,
    } else {
    }
    return
  }
  func.func @transform_0(%arg0: i32, %arg1: i32, %arg2: i32) -> (i32, i32) {
    %c0_i32 = arith.constant 0 : i32
    return %arg0, %arg2 : i32, i32
  }
  func.func @transform_1(%arg0: i32, %arg1: i32, %arg2: i32) -> (i32, i32) {
    %c0_i32 = arith.constant 0 : i32
    return %arg2, %arg1 : i32, i32
  }
  func.func @transform_2(%arg0: i32, %arg1: i32, %arg2: i32) -> (i32, i32) {
    %c0_i32 = arith.constant 0 : i32
    %c0_i32_0 = arith.constant 0 : i32
    return %c0_i32, %arg1 : i32, i32
  }
  func.func @transform_3(%arg0: i32, %arg1: i32, %arg2: i32) -> (i32, i32) {
    %c0_i32 = arith.constant 0 : i32
    return %arg0, %arg1 : i32, i32
  }
}

module attributes {stable_mosaic.version = 11 : i64} {
  func.func @_ln_matmul_kernel(%arg0: i32, %arg1: i32, %arg2: memref<16x32xbf16, #tpu.memory_space<vmem>>, %arg3: memref<1x32xf32, #tpu.memory_space<vmem>>, %arg4: memref<1x32xf32, #tpu.memory_space<vmem>>, %arg5: memref<32x96xbf16, #tpu.memory_space<vmem>>, %arg6: memref<1x96xf32, #tpu.memory_space<vmem>>, %arg7: memref<16x96xbf16, #tpu.memory_space<vmem>>, %arg8: memref<16x32xbf16, #tpu.memory_space<vmem>>) attributes {dimension_semantics = [#tpu.dimension_semantics<parallel>, #tpu.dimension_semantics<arbitrary>], iteration_bounds = array<i64: 1, 1>, scalar_prefetch = 0 : i64, scratch_operands = 1 : i64, tpu.core_type = #tpu.core_type<tc>, window_params = [{transform_indices = @transform_0, window_bounds = array<i64: 16, 32>}, {pipeline_mode = #tpu.pipeline_mode<synchronous>, transform_indices = @transform_1, window_bounds = array<i64: 1, 32>}, {pipeline_mode = #tpu.pipeline_mode<synchronous>, transform_indices = @transform_2, window_bounds = array<i64: 1, 32>}, {transform_indices = @transform_3, window_bounds = array<i64: 32, 96>}, {transform_indices = @transform_4, window_bounds = array<i64: 1, 96>}, {transform_indices = @transform_5, window_bounds = array<i64: 16, 96>}]} {
    %c0_i32 = arith.constant 0 : i32
    %0 = arith.cmpi eq, %arg1, %c0_i32 : i32
    %1 = arith.extui %0 : i1 to i32
    %c0_i32_0 = arith.constant 0 : i32
    %2 = arith.cmpi ne, %1, %c0_i32_0 : i32
    scf.if %2 {
      %c0_8 = arith.constant 0 : index
      %c0_9 = arith.constant 0 : index
      %11 = vector.load %arg2[%c0_8, %c0_9] : memref<16x32xbf16, #tpu.memory_space<vmem>>, vector<16x32xbf16>
      %12 = arith.extf %11 : vector<16x32xbf16> to vector<16x32xf32>
      %cst_10 = arith.constant dense<0.000000e+00> : vector<16xf32>
      %13 = vector.multi_reduction <add>, %12, %cst_10 [1] : vector<16x32xf32> to vector<16xf32>
      %14 = vector.shape_cast %13 : vector<16xf32> to vector<16x1xf32>
      %cst_11 = arith.constant 3.200000e+01 : f32
      %15 = vector.broadcast %cst_11 : f32 to vector<16x1xf32>
      %16 = arith.divf %14, %15 : vector<16x1xf32>
      %17 = vector.broadcast %16 : vector<16x1xf32> to vector<16x32xf32>
      %18 = arith.subf %12, %17 : vector<16x32xf32>
      %19 = arith.mulf %18, %18 : vector<16x32xf32>
      %cst_12 = arith.constant dense<0.000000e+00> : vector<16xf32>
      %20 = vector.multi_reduction <add>, %19, %cst_12 [1] : vector<16x32xf32> to vector<16xf32>
      %21 = vector.shape_cast %20 : vector<16xf32> to vector<16x1xf32>
      %cst_13 = arith.constant 3.200000e+01 : f32
      %22 = vector.broadcast %cst_13 : f32 to vector<16x1xf32>
      %23 = arith.divf %21, %22 : vector<16x1xf32>
      %24 = vector.broadcast %16 : vector<16x1xf32> to vector<16x32xf32>
      %25 = arith.subf %12, %24 : vector<16x32xf32>
      %cst_14 = arith.constant 9.99999997E-7 : f32
      %26 = vector.broadcast %cst_14 : f32 to vector<16x1xf32>
      %27 = arith.addf %23, %26 : vector<16x1xf32>
      %28 = math.rsqrt %27 : vector<16x1xf32>
      %29 = vector.broadcast %28 : vector<16x1xf32> to vector<16x32xf32>
      %30 = arith.mulf %25, %29 : vector<16x32xf32>
      %c0_15 = arith.constant 0 : index
      %c0_16 = arith.constant 0 : index
      %31 = vector.load %arg3[%c0_15, %c0_16] : memref<1x32xf32, #tpu.memory_space<vmem>>, vector<1x32xf32>
      %32 = vector.broadcast %31 : vector<1x32xf32> to vector<16x32xf32>
      %33 = arith.mulf %30, %32 : vector<16x32xf32>
      %c0_17 = arith.constant 0 : index
      %c0_18 = arith.constant 0 : index
      %34 = vector.load %arg4[%c0_17, %c0_18] : memref<1x32xf32, #tpu.memory_space<vmem>>, vector<1x32xf32>
      %35 = vector.broadcast %34 : vector<1x32xf32> to vector<16x32xf32>
      %36 = arith.addf %33, %35 : vector<16x32xf32>
      %37 = arith.truncf %36 : vector<16x32xf32> to vector<16x32xbf16>
      %c0_19 = arith.constant 0 : index
      %c0_20 = arith.constant 0 : index
      %38 = vector.load %arg8[%c0_19, %c0_20] : memref<16x32xbf16, #tpu.memory_space<vmem>>, vector<16x32xbf16>
      tpu.vector_store %arg8[%c0_19, %c0_20], %37 {strides = array<i32>} : memref<16x32xbf16, #tpu.memory_space<vmem>>, vector<16x32xbf16>,
    } else {
    }
    %c0 = arith.constant 0 : index
    %c0_1 = arith.constant 0 : index
    %3 = vector.load %arg8[%c0, %c0_1] : memref<16x32xbf16, #tpu.memory_space<vmem>>, vector<16x32xbf16>
    %c0_2 = arith.constant 0 : index
    %c0_3 = arith.constant 0 : index
    %4 = vector.load %arg5[%c0_2, %c0_3] : memref<32x96xbf16, #tpu.memory_space<vmem>>, vector<32x96xbf16>
    %cst = arith.constant dense<0.000000e+00> : vector<16x96xf32>
    %5 = tpu.matmul %3, %4, %cst {dimension_numbers = #tpu.dot_dimension_numbers<[1], [0], [0], [1], [0, 0, 1, 1], [], []>} : vector<16x32xbf16>, vector<32x96xbf16>, vector<16x96xf32> -> vector<16x96xf32>
    %c0_4 = arith.constant 0 : index
    %c0_5 = arith.constant 0 : index
    %6 = vector.load %arg6[%c0_4, %c0_5] : memref<1x96xf32, #tpu.memory_space<vmem>>, vector<1x96xf32>
    %7 = vector.broadcast %6 : vector<1x96xf32> to vector<16x96xf32>
    %8 = arith.addf %5, %7 : vector<16x96xf32>
    %9 = arith.truncf %8 : vector<16x96xf32> to vector<16x96xbf16>
    %c0_6 = arith.constant 0 : index
    %c0_7 = arith.constant 0 : index
    %10 = vector.load %arg7[%c0_6, %c0_7] : memref<16x96xbf16, #tpu.memory_space<vmem>>, vector<16x96xbf16>
    tpu.vector_store %arg7[%c0_6, %c0_7], %9 {strides = array<i32>} : memref<16x96xbf16, #tpu.memory_space<vmem>>, vector<16x96xbf16>,
    return
  }
  func.func @transform_0(%arg0: i32, %arg1: i32) -> (i32, i32) {
    %c0_i32 = arith.constant 0 : i32
    %c0_i32_0 = arith.constant 0 : i32
    return %arg0, %c0_i32 : i32, i32
  }
  func.func @transform_1(%arg0: i32, %arg1: i32) -> (i32, i32) {
    %c0_i32 = arith.constant 0 : i32
    %c0_i32_0 = arith.constant 0 : i32
    %c0_i32_1 = arith.constant 0 : i32
    return %c0_i32, %c0_i32_0 : i32, i32
  }
  func.func @transform_2(%arg0: i32, %arg1: i32) -> (i32, i32) {
    %c0_i32 = arith.constant 0 : i32
    %c0_i32_0 = arith.constant 0 : i32
    %c0_i32_1 = arith.constant 0 : i32
    return %c0_i32, %c0_i32_0 : i32, i32
  }
  func.func @transform_3(%arg0: i32, %arg1: i32) -> (i32, i32) {
    %c0_i32 = arith.constant 0 : i32
    %c0_i32_0 = arith.constant 0 : i32
    return %c0_i32, %arg1 : i32, i32
  }
  func.func @transform_4(%arg0: i32, %arg1: i32) -> (i32, i32) {
    %c0_i32 = arith.constant 0 : i32
    %c0_i32_0 = arith.constant 0 : i32
    return %c0_i32, %arg1 : i32, i32
  }
  func.func @transform_5(%arg0: i32, %arg1: i32) -> (i32, i32) {
    %c0_i32 = arith.constant 0 : i32
    return %arg0, %arg1 : i32, i32
  }
}

module attributes {stable_mosaic.version = 11 : i64} {
  func.func @_matmul_kernel(%arg0: i32, %arg1: i32, %arg2: i32, %arg3: memref<16x32xbf16, #tpu.memory_space<vmem>>, %arg4: memref<32x32xbf16, #tpu.memory_space<vmem>>, %arg5: memref<1x32xf32, #tpu.memory_space<vmem>>, %arg6: memref<16x32xbf16, #tpu.memory_space<vmem>>, %arg7: memref<16x32xbf16, #tpu.memory_space<vmem>>, %arg8: memref<16x32xf32, #tpu.memory_space<vmem>>) attributes {dimension_semantics = [#tpu.dimension_semantics<parallel>, #tpu.dimension_semantics<parallel>, #tpu.dimension_semantics<arbitrary>], iteration_bounds = array<i64: 1, 1, 1>, scalar_prefetch = 0 : i64, scratch_operands = 1 : i64, tpu.core_type = #tpu.core_type<tc>, window_params = [{transform_indices = @transform_0, window_bounds = array<i64: 16, 32>}, {transform_indices = @transform_1, window_bounds = array<i64: 32, 32>}, {transform_indices = @transform_2, window_bounds = array<i64: 1, 32>}, {transform_indices = @transform_3, window_bounds = array<i64: 16, 32>}, {transform_indices = @transform_4, window_bounds = array<i64: 16, 32>}]} {
    %c0 = arith.constant 0 : index
    %c0_0 = arith.constant 0 : index
    %0 = vector.load %arg3[%c0, %c0_0] : memref<16x32xbf16, #tpu.memory_space<vmem>>, vector<16x32xbf16>
    %c0_1 = arith.constant 0 : index
    %c0_2 = arith.constant 0 : index
    %1 = vector.load %arg4[%c0_1, %c0_2] : memref<32x32xbf16, #tpu.memory_space<vmem>>, vector<32x32xbf16>
    %cst = arith.constant dense<0.000000e+00> : vector<16x32xf32>
    %2 = tpu.matmul %0, %1, %cst {dimension_numbers = #tpu.dot_dimension_numbers<[1], [0], [0], [1], [0, 0, 1, 1], [], []>} : vector<16x32xbf16>, vector<32x32xbf16>, vector<16x32xf32> -> vector<16x32xf32>
    %c0_i32 = arith.constant 0 : i32
    %3 = arith.cmpi eq, %arg2, %c0_i32 : i32
    %4 = arith.extui %3 : i1 to i32
    %c0_i32_3 = arith.constant 0 : i32
    %5 = arith.cmpi ne, %4, %c0_i32_3 : i32
    scf.if %5 {
      %c0_8 = arith.constant 0 : index
      %c0_9 = arith.constant 0 : index
      %12 = vector.load %arg8[%c0_8, %c0_9] : memref<16x32xf32, #tpu.memory_space<vmem>>, vector<16x32xf32>
      tpu.vector_store %arg8[%c0_8, %c0_9], %2 {strides = array<i32>} : memref<16x32xf32, #tpu.memory_space<vmem>>, vector<16x32xf32>,
    } else {
    }
    %c0_i32_4 = arith.constant 0 : i32
    %6 = arith.cmpi sgt, %arg2, %c0_i32_4 : i32
    %7 = arith.extui %6 : i1 to i32
    %c0_i32_5 = arith.constant 0 : i32
    %8 = arith.cmpi ne, %7, %c0_i32_5 : i32
    scf.if %8 {
      %c0_8 = arith.constant 0 : index
      %c0_9 = arith.constant 0 : index
      %12 = vector.load %arg8[%c0_8, %c0_9] : memref<16x32xf32, #tpu.memory_space<vmem>>, vector<16x32xf32>
      %13 = arith.addf %12, %2 : vector<16x32xf32>
      %c0_10 = arith.constant 0 : index
      %c0_11 = arith.constant 0 : index
      %14 = vector.load %arg8[%c0_10, %c0_11] : memref<16x32xf32, #tpu.memory_space<vmem>>, vector<16x32xf32>
      tpu.vector_store %arg8[%c0_10, %c0_11], %13 {strides = array<i32>} : memref<16x32xf32, #tpu.memory_space<vmem>>, vector<16x32xf32>,
    } else {
    }
    %c0_i32_6 = arith.constant 0 : i32
    %9 = arith.cmpi eq, %arg2, %c0_i32_6 : i32
    %10 = arith.extui %9 : i1 to i32
    %c0_i32_7 = arith.constant 0 : i32
    %11 = arith.cmpi ne, %10, %c0_i32_7 : i32
    scf.if %11 {
      %c0_8 = arith.constant 0 : index
      %c0_9 = arith.constant 0 : index
      %12 = vector.load %arg8[%c0_8, %c0_9] : memref<16x32xf32, #tpu.memory_space<vmem>>, vector<16x32xf32>
      %c0_10 = arith.constant 0 : index
      %c0_11 = arith.constant 0 : index
      %13 = vector.load %arg5[%c0_10, %c0_11] : memref<1x32xf32, #tpu.memory_space<vmem>>, vector<1x32xf32>
      %14 = vector.broadcast %13 : vector<1x32xf32> to vector<16x32xf32>
      %15 = arith.addf %12, %14 : vector<16x32xf32>
      %c0_12 = arith.constant 0 : index
      %c0_13 = arith.constant 0 : index
      %16 = vector.load %arg6[%c0_12, %c0_13] : memref<16x32xbf16, #tpu.memory_space<vmem>>, vector<16x32xbf16>
      %17 = arith.extf %16 : vector<16x32xbf16> to vector<16x32xf32>
      %18 = arith.addf %15, %17 : vector<16x32xf32>
      %19 = arith.truncf %18 : vector<16x32xf32> to vector<16x32xbf16>
      %c0_14 = arith.constant 0 : index
      %c0_15 = arith.constant 0 : index
      %20 = vector.load %arg7[%c0_14, %c0_15] : memref<16x32xbf16, #tpu.memory_space<vmem>>, vector<16x32xbf16>
      tpu.vector_store %arg7[%c0_14, %c0_15], %19 {strides = array<i32>} : memref<16x32xbf16, #tpu.memory_space<vmem>>, vector<16x32xbf16>,
    } else {
    }
    return
  }
  func.func @transform_0(%arg0: i32, %arg1: i32, %arg2: i32) -> (i32, i32) {
    %c0_i32 = arith.constant 0 : i32
    return %arg0, %arg2 : i32, i32
  }
  func.func @transform_1(%arg0: i32, %arg1: i32, %arg2: i32) -> (i32, i32) {
    %c0_i32 = arith.constant 0 : i32
    return %arg2, %arg1 : i32, i32
  }
  func.func @transform_2(%arg0: i32, %arg1: i32, %arg2: i32) -> (i32, i32) {
    %c0_i32 = arith.constant 0 : i32
    %c0_i32_0 = arith.constant 0 : i32
    return %c0_i32, %arg1 : i32, i32
  }
  func.func @transform_3(%arg0: i32, %arg1: i32, %arg2: i32) -> (i32, i32) {
    %c0_i32 = arith.constant 0 : i32
    return %arg0, %arg1 : i32, i32
  }
  func.func @transform_4(%arg0: i32, %arg1: i32, %arg2: i32) -> (i32, i32) {
    %c0_i32 = arith.constant 0 : i32
    return %arg0, %arg1 : i32, i32
  }
}

module attributes {stable_mosaic.version = 11 : i64} {
  func.func @_attention_kernel(%arg0: i32, %arg1: memref<1x8x96xbf16, #tpu.memory_space<vmem>>, %arg2: memref<1x8x32xbf16, #tpu.memory_space<vmem>>) attributes {dimension_semantics = [#tpu.dimension_semantics<parallel>], iteration_bounds = array<i64: 2>, scalar_prefetch = 0 : i64, scratch_operands = 0 : i64, tpu.core_type = #tpu.core_type<tc>, window_params = [{transform_indices = @transform_0, window_bounds = array<i64: 1, 8, 96>}, {transform_indices = @transform_1, window_bounds = array<i64: 1, 8, 32>}]} {
    %0 = tpu.iota {dimensions = array<i32: 1>} : vector<8x8xi32>
    %c5_i32 = arith.constant 5 : i32
    %1 = vector.broadcast %c5_i32 : i32 to vector<8x8xi32>
    %2 = arith.cmpi slt, %0, %1 : vector<8x8xi32>
    %c0 = arith.constant 0 : index
    %c0_0 = arith.constant 0 : index
    %c0_1 = arith.constant 0 : index
    %3 = vector.load %arg1[%c0, %c0_0, %c0_1] : memref<1x8x96xbf16, #tpu.memory_space<vmem>>, vector<1x8x8xbf16>
    %4 = vector.shape_cast %3 : vector<1x8x8xbf16> to vector<8x8xbf16>
    %c0_2 = arith.constant 0 : index
    %c0_3 = arith.constant 0 : index
    %c32 = arith.constant 32 : index
    %5 = vector.load %arg1[%c0_2, %c0_3, %c32] : memref<1x8x96xbf16, #tpu.memory_space<vmem>>, vector<1x8x8xbf16>
    %6 = vector.shape_cast %5 : vector<1x8x8xbf16> to vector<8x8xbf16>
    %c0_4 = arith.constant 0 : index
    %c0_5 = arith.constant 0 : index
    %c64 = arith.constant 64 : index
    %7 = vector.load %arg1[%c0_4, %c0_5, %c64] : memref<1x8x96xbf16, #tpu.memory_space<vmem>>, vector<1x8x8xbf16>
    %8 = vector.shape_cast %7 : vector<1x8x8xbf16> to vector<8x8xbf16>
    %cst = arith.constant dense<0.000000e+00> : vector<8x8xf32>
    %9 = tpu.matmul %4, %6, %cst {dimension_numbers = #tpu.dot_dimension_numbers<[1], [1], [0], [0], [0, 0, 1, 0], [], []>} : vector<8x8xbf16>, vector<8x8xbf16>, vector<8x8xf32> -> vector<8x8xf32>
    %cst_6 = arith.constant -1.000000e+30 : f32
    %10 = vector.broadcast %cst_6 : f32 to vector<8x8xf32>
    %11 = arith.select %2, %9, %10 : vector<8x8xi1>, vector<8x8xf32>
    %cst_7 = arith.constant dense<0xFF800000> : vector<8xf32>
    %12 = vector.multi_reduction <maximumf>, %11, %cst_7 [1] : vector<8x8xf32> to vector<8xf32>
    %13 = vector.shape_cast %12 : vector<8xf32> to vector<8x1xf32>
    %14 = vector.broadcast %13 : vector<8x1xf32> to vector<8x8xf32>
    %15 = arith.subf %11, %14 : vector<8x8xf32>
    %16 = math.exp %15 : vector<8x8xf32>
    %cst_8 = arith.constant dense<0.000000e+00> : vector<8xf32>
    %17 = vector.multi_reduction <add>, %16, %cst_8 [1] : vector<8x8xf32> to vector<8xf32>
    %18 = vector.shape_cast %17 : vector<8xf32> to vector<8x1xf32>
    %19 = tpu.reciprocal %18 {approx = true} : vector<8x1xf32> -> vector<8x1xf32>
    %20 = vector.broadcast %19 : vector<8x1xf32> to vector<8x8xf32>
    %21 = arith.mulf %16, %20 : vector<8x8xf32>
    %22 = arith.truncf %21 : vector<8x8xf32> to vector<8x8xbf16>
    %cst_9 = arith.constant dense<0.000000e+00> : vector<8x8xf32>
    %23 = tpu.matmul %22, %8, %cst_9 {dimension_numbers = #tpu.dot_dimension_numbers<[1], [0], [0], [1], [0, 0, 1, 1], [], []>} : vector<8x8xbf16>, vector<8x8xbf16>, vector<8x8xf32> -> vector<8x8xf32>
    %24 = arith.truncf %23 : vector<8x8xf32> to vector<8x8xbf16>
    %c0_10 = arith.constant 0 : index
    %c0_11 = arith.constant 0 : index
    %c0_12 = arith.constant 0 : index
    %25 = vector.load %arg2[%c0_10, %c0_11, %c0_12] : memref<1x8x32xbf16, #tpu.memory_space<vmem>>, vector<1x8x8xbf16>
    %26 = vector.shape_cast %25 : vector<1x8x8xbf16> to vector<8x8xbf16>
    %27 = vector.shape_cast %24 : vector<8x8xbf16> to vector<1x8x8xbf16>
    tpu.vector_store %arg2[%c0_10, %c0_11, %c0_12], %27 {strides = array<i32>} : memref<1x8x32xbf16, #tpu.memory_space<vmem>>, vector<1x8x8xbf16>,
    %c0_13 = arith.constant 0 : index
    %c0_14 = arith.constant 0 : index
    %c8 = arith.constant 8 : index
    %28 = vector.load %arg1[%c0_13, %c0_14, %c8] : memref<1x8x96xbf16, #tpu.memory_space<vmem>>, vector<1x8x8xbf16>
    %29 = vector.shape_cast %28 : vector<1x8x8xbf16> to vector<8x8xbf16>
    %c0_15 = arith.constant 0 : index
    %c0_16 = arith.constant 0 : index
    %c40 = arith.constant 40 : index
    %30 = vector.load %arg1[%c0_15, %c0_16, %c40] : memref<1x8x96xbf16, #tpu.memory_space<vmem>>, vector<1x8x8xbf16>
    %31 = vector.shape_cast %30 : vector<1x8x8xbf16> to vector<8x8xbf16>
    %c0_17 = arith.constant 0 : index
    %c0_18 = arith.constant 0 : index
    %c72 = arith.constant 72 : index
    %32 = vector.load %arg1[%c0_17, %c0_18, %c72] : memref<1x8x96xbf16, #tpu.memory_space<vmem>>, vector<1x8x8xbf16>
    %33 = vector.shape_cast %32 : vector<1x8x8xbf16> to vector<8x8xbf16>
    %cst_19 = arith.constant dense<0.000000e+00> : vector<8x8xf32>
    %34 = tpu.matmul %29, %31, %cst_19 {dimension_numbers = #tpu.dot_dimension_numbers<[1], [1], [0], [0], [0, 0, 1, 0], [], []>} : vector<8x8xbf16>, vector<8x8xbf16>, vector<8x8xf32> -> vector<8x8xf32>
    %cst_20 = arith.constant -1.000000e+30 : f32
    %35 = vector.broadcast %cst_20 : f32 to vector<8x8xf32>
    %36 = arith.select %2, %34, %35 : vector<8x8xi1>, vector<8x8xf32>
    %cst_21 = arith.constant dense<0xFF800000> : vector<8xf32>
    %37 = vector.multi_reduction <maximumf>, %36, %cst_21 [1] : vector<8x8xf32> to vector<8xf32>
    %38 = vector.shape_cast %37 : vector<8xf32> to vector<8x1xf32>
    %39 = vector.broadcast %38 : vector<8x1xf32> to vector<8x8xf32>
    %40 = arith.subf %36, %39 : vector<8x8xf32>
    %41 = math.exp %40 : vector<8x8xf32>
    %cst_22 = arith.constant dense<0.000000e+00> : vector<8xf32>
    %42 = vector.multi_reduction <add>, %41, %cst_22 [1] : vector<8x8xf32> to vector<8xf32>
    %43 = vector.shape_cast %42 : vector<8xf32> to vector<8x1xf32>
    %44 = tpu.reciprocal %43 {approx = true} : vector<8x1xf32> -> vector<8x1xf32>
    %45 = vector.broadcast %44 : vector<8x1xf32> to vector<8x8xf32>
    %46 = arith.mulf %41, %45 : vector<8x8xf32>
    %47 = arith.truncf %46 : vector<8x8xf32> to vector<8x8xbf16>
    %cst_23 = arith.constant dense<0.000000e+00> : vector<8x8xf32>
    %48 = tpu.matmul %47, %33, %cst_23 {dimension_numbers = #tpu.dot_dimension_numbers<[1], [0], [0], [1], [0, 0, 1, 1], [], []>} : vector<8x8xbf16>, vector<8x8xbf16>, vector<8x8xf32> -> vector<8x8xf32>
    %49 = arith.truncf %48 : vector<8x8xf32> to vector<8x8xbf16>
    %c0_24 = arith.constant 0 : index
    %c0_25 = arith.constant 0 : index
    %c8_26 = arith.constant 8 : index
    %50 = vector.load %arg2[%c0_24, %c0_25, %c8_26] : memref<1x8x32xbf16, #tpu.memory_space<vmem>>, vector<1x8x8xbf16>
    %51 = vector.shape_cast %50 : vector<1x8x8xbf16> to vector<8x8xbf16>
    %52 = vector.shape_cast %49 : vector<8x8xbf16> to vector<1x8x8xbf16>
    tpu.vector_store %arg2[%c0_24, %c0_25, %c8_26], %52 {strides = array<i32>} : memref<1x8x32xbf16, #tpu.memory_space<vmem>>, vector<1x8x8xbf16>,
    %c0_27 = arith.constant 0 : index
    %c0_28 = arith.constant 0 : index
    %c16 = arith.constant 16 : index
    %53 = vector.load %arg1[%c0_27, %c0_28, %c16] : memref<1x8x96xbf16, #tpu.memory_space<vmem>>, vector<1x8x8xbf16>
    %54 = vector.shape_cast %53 : vector<1x8x8xbf16> to vector<8x8xbf16>
    %c0_29 = arith.constant 0 : index
    %c0_30 = arith.constant 0 : index
    %c48 = arith.constant 48 : index
    %55 = vector.load %arg1[%c0_29, %c0_30, %c48] : memref<1x8x96xbf16, #tpu.memory_space<vmem>>, vector<1x8x8xbf16>
    %56 = vector.shape_cast %55 : vector<1x8x8xbf16> to vector<8x8xbf16>
    %c0_31 = arith.constant 0 : index
    %c0_32 = arith.constant 0 : index
    %c80 = arith.constant 80 : index
    %57 = vector.load %arg1[%c0_31, %c0_32, %c80] : memref<1x8x96xbf16, #tpu.memory_space<vmem>>, vector<1x8x8xbf16>
    %58 = vector.shape_cast %57 : vector<1x8x8xbf16> to vector<8x8xbf16>
    %cst_33 = arith.constant dense<0.000000e+00> : vector<8x8xf32>
    %59 = tpu.matmul %54, %56, %cst_33 {dimension_numbers = #tpu.dot_dimension_numbers<[1], [1], [0], [0], [0, 0, 1, 0], [], []>} : vector<8x8xbf16>, vector<8x8xbf16>, vector<8x8xf32> -> vector<8x8xf32>
    %cst_34 = arith.constant -1.000000e+30 : f32
    %60 = vector.broadcast %cst_34 : f32 to vector<8x8xf32>
    %61 = arith.select %2, %59, %60 : vector<8x8xi1>, vector<8x8xf32>
    %cst_35 = arith.constant dense<0xFF800000> : vector<8xf32>
    %62 = vector.multi_reduction <maximumf>, %61, %cst_35 [1] : vector<8x8xf32> to vector<8xf32>
    %63 = vector.shape_cast %62 : vector<8xf32> to vector<8x1xf32>
    %64 = vector.broadcast %63 : vector<8x1xf32> to vector<8x8xf32>
    %65 = arith.subf %61, %64 : vector<8x8xf32>
    %66 = math.exp %65 : vector<8x8xf32>
    %cst_36 = arith.constant dense<0.000000e+00> : vector<8xf32>
    %67 = vector.multi_reduction <add>, %66, %cst_36 [1] : vector<8x8xf32> to vector<8xf32>
    %68 = vector.shape_cast %67 : vector<8xf32> to vector<8x1xf32>
    %69 = tpu.reciprocal %68 {approx = true} : vector<8x1xf32> -> vector<8x1xf32>
    %70 = vector.broadcast %69 : vector<8x1xf32> to vector<8x8xf32>
    %71 = arith.mulf %66, %70 : vector<8x8xf32>
    %72 = arith.truncf %71 : vector<8x8xf32> to vector<8x8xbf16>
    %cst_37 = arith.constant dense<0.000000e+00> : vector<8x8xf32>
    %73 = tpu.matmul %72, %58, %cst_37 {dimension_numbers = #tpu.dot_dimension_numbers<[1], [0], [0], [1], [0, 0, 1, 1], [], []>} : vector<8x8xbf16>, vector<8x8xbf16>, vector<8x8xf32> -> vector<8x8xf32>
    %74 = arith.truncf %73 : vector<8x8xf32> to vector<8x8xbf16>
    %c0_38 = arith.constant 0 : index
    %c0_39 = arith.constant 0 : index
    %c16_40 = arith.constant 16 : index
    %75 = vector.load %arg2[%c0_38, %c0_39, %c16_40] : memref<1x8x32xbf16, #tpu.memory_space<vmem>>, vector<1x8x8xbf16>
    %76 = vector.shape_cast %75 : vector<1x8x8xbf16> to vector<8x8xbf16>
    %77 = vector.shape_cast %74 : vector<8x8xbf16> to vector<1x8x8xbf16>
    tpu.vector_store %arg2[%c0_38, %c0_39, %c16_40], %77 {strides = array<i32>} : memref<1x8x32xbf16, #tpu.memory_space<vmem>>, vector<1x8x8xbf16>,
    %c0_41 = arith.constant 0 : index
    %c0_42 = arith.constant 0 : index
    %c24 = arith.constant 24 : index
    %78 = vector.load %arg1[%c0_41, %c0_42, %c24] : memref<1x8x96xbf16, #tpu.memory_space<vmem>>, vector<1x8x8xbf16>
    %79 = vector.shape_cast %78 : vector<1x8x8xbf16> to vector<8x8xbf16>
    %c0_43 = arith.constant 0 : index
    %c0_44 = arith.constant 0 : index
    %c56 = arith.constant 56 : index
    %80 = vector.load %arg1[%c0_43, %c0_44, %c56] : memref<1x8x96xbf16, #tpu.memory_space<vmem>>, vector<1x8x8xbf16>
    %81 = vector.shape_cast %80 : vector<1x8x8xbf16> to vector<8x8xbf16>
    %c0_45 = arith.constant 0 : index
    %c0_46 = arith.constant 0 : index
    %c88 = arith.constant 88 : index
    %82 = vector.load %arg1[%c0_45, %c0_46, %c88] : memref<1x8x96xbf16, #tpu.memory_space<vmem>>, vector<1x8x8xbf16>
    %83 = vector.shape_cast %82 : vector<1x8x8xbf16> to vector<8x8xbf16>
    %cst_47 = arith.constant dense<0.000000e+00> : vector<8x8xf32>
    %84 = tpu.matmul %79, %81, %cst_47 {dimension_numbers = #tpu.dot_dimension_numbers<[1], [1], [0], [0], [0, 0, 1, 0], [], []>} : vector<8x8xbf16>, vector<8x8xbf16>, vector<8x8xf32> -> vector<8x8xf32>
    %cst_48 = arith.constant -1.000000e+30 : f32
    %85 = vector.broadcast %cst_48 : f32 to vector<8x8xf32>
    %86 = arith.select %2, %84, %85 : vector<8x8xi1>, vector<8x8xf32>
    %cst_49 = arith.constant dense<0xFF800000> : vector<8xf32>
    %87 = vector.multi_reduction <maximumf>, %86, %cst_49 [1] : vector<8x8xf32> to vector<8xf32>
    %88 = vector.shape_cast %87 : vector<8xf32> to vector<8x1xf32>
    %89 = vector.broadcast %88 : vector<8x1xf32> to vector<8x8xf32>
    %90 = arith.subf %86, %89 : vector<8x8xf32>
    %91 = math.exp %90 : vector<8x8xf32>
    %cst_50 = arith.constant dense<0.000000e+00> : vector<8xf32>
    %92 = vector.multi_reduction <add>, %91, %cst_50 [1] : vector<8x8xf32> to vector<8xf32>
    %93 = vector.shape_cast %92 : vector<8xf32> to vector<8x1xf32>
    %94 = tpu.reciprocal %93 {approx = true} : vector<8x1xf32> -> vector<8x1xf32>
    %95 = vector.broadcast %94 : vector<8x1xf32> to vector<8x8xf32>
    %96 = arith.mulf %91, %95 : vector<8x8xf32>
    %97 = arith.truncf %96 : vector<8x8xf32> to vector<8x8xbf16>
    %cst_51 = arith.constant dense<0.000000e+00> : vector<8x8xf32>
    %98 = tpu.matmul %97, %83, %cst_51 {dimension_numbers = #tpu.dot_dimension_numbers<[1], [0], [0], [1], [0, 0, 1, 1], [], []>} : vector<8x8xbf16>, vector<8x8xbf16>, vector<8x8xf32> -> vector<8x8xf32>
    %99 = arith.truncf %98 : vector<8x8xf32> to vector<8x8xbf16>
    %c0_52 = arith.constant 0 : index
    %c0_53 = arith.constant 0 : index
    %c24_54 = arith.constant 24 : index
    %100 = vector.load %arg2[%c0_52, %c0_53, %c24_54] : memref<1x8x32xbf16, #tpu.memory_space<vmem>>, vector<1x8x8xbf16>
    %101 = vector.shape_cast %100 : vector<1x8x8xbf16> to vector<8x8xbf16>
    %102 = vector.shape_cast %99 : vector<8x8xbf16> to vector<1x8x8xbf16>
    tpu.vector_store %arg2[%c0_52, %c0_53, %c24_54], %102 {strides = array<i32>} : memref<1x8x32xbf16, #tpu.memory_space<vmem>>, vector<1x8x8xbf16>,
    return
  }
  func.func @transform_0(%arg0: i32) -> (i32, i32, i32) {
    %c0_i32 = arith.constant 0 : i32
    %c0_i32_0 = arith.constant 0 : i32
    %c0_i32_1 = arith.constant 0 : i32
    return %arg0, %c0_i32, %c0_i32_0 : i32, i32, i32
  }
  func.func @transform_1(%arg0: i32) -> (i32, i32, i32) {
    %c0_i32 = arith.constant 0 : i32
    %c0_i32_0 = arith.constant 0 : i32
    %c0_i32_1 = arith.constant 0 : i32
    return %arg0, %c0_i32, %c0_i32_0 : i32, i32, i32
  }
}

module attributes {stable_mosaic.version = 11 : i64} {
  func.func @_ln_matmul_kernel(%arg0: i32, %arg1: i32, %arg2: memref<16x32xbf16, #tpu.memory_space<vmem>>, %arg3: memref<1x32xf32, #tpu.memory_space<vmem>>, %arg4: memref<1x32xf32, #tpu.memory_space<vmem>>, %arg5: memref<32x128xbf16, #tpu.memory_space<vmem>>, %arg6: memref<1x128xf32, #tpu.memory_space<vmem>>, %arg7: memref<16x128xbf16, #tpu.memory_space<vmem>>, %arg8: memref<16x32xbf16, #tpu.memory_space<vmem>>) attributes {dimension_semantics = [#tpu.dimension_semantics<parallel>, #tpu.dimension_semantics<arbitrary>], iteration_bounds = array<i64: 1, 1>, scalar_prefetch = 0 : i64, scratch_operands = 1 : i64, tpu.core_type = #tpu.core_type<tc>, window_params = [{transform_indices = @transform_0, window_bounds = array<i64: 16, 32>}, {pipeline_mode = #tpu.pipeline_mode<synchronous>, transform_indices = @transform_1, window_bounds = array<i64: 1, 32>}, {pipeline_mode = #tpu.pipeline_mode<synchronous>, transform_indices = @transform_2, window_bounds = array<i64: 1, 32>}, {transform_indices = @transform_3, window_bounds = array<i64: 32, 128>}, {transform_indices = @transform_4, window_bounds = array<i64: 1, 128>}, {transform_indices = @transform_5, window_bounds = array<i64: 16, 128>}]} {
    %c0_i32 = arith.constant 0 : i32
    %0 = arith.cmpi eq, %arg1, %c0_i32 : i32
    %1 = arith.extui %0 : i1 to i32
    %c0_i32_0 = arith.constant 0 : i32
    %2 = arith.cmpi ne, %1, %c0_i32_0 : i32
    scf.if %2 {
      %c0_12 = arith.constant 0 : index
      %c0_13 = arith.constant 0 : index
      %24 = vector.load %arg2[%c0_12, %c0_13] : memref<16x32xbf16, #tpu.memory_space<vmem>>, vector<16x32xbf16>
      %25 = arith.extf %24 : vector<16x32xbf16> to vector<16x32xf32>
      %cst_14 = arith.constant dense<0.000000e+00> : vector<16xf32>
      %26 = vector.multi_reduction <add>, %25, %cst_14 [1] : vector<16x32xf32> to vector<16xf32>
      %27 = vector.shape_cast %26 : vector<16xf32> to vector<16x1xf32>
      %cst_15 = arith.constant 3.200000e+01 : f32
      %28 = vector.broadcast %cst_15 : f32 to vector<16x1xf32>
      %29 = arith.divf %27, %28 : vector<16x1xf32>
      %30 = vector.broadcast %29 : vector<16x1xf32> to vector<16x32xf32>
      %31 = arith.subf %25, %30 : vector<16x32xf32>
      %32 = arith.mulf %31, %31 : vector<16x32xf32>
      %cst_16 = arith.constant dense<0.000000e+00> : vector<16xf32>
      %33 = vector.multi_reduction <add>, %32, %cst_16 [1] : vector<16x32xf32> to vector<16xf32>
      %34 = vector.shape_cast %33 : vector<16xf32> to vector<16x1xf32>
      %cst_17 = arith.constant 3.200000e+01 : f32
      %35 = vector.broadcast %cst_17 : f32 to vector<16x1xf32>
      %36 = arith.divf %34, %35 : vector<16x1xf32>
      %37 = vector.broadcast %29 : vector<16x1xf32> to vector<16x32xf32>
      %38 = arith.subf %25, %37 : vector<16x32xf32>
      %cst_18 = arith.constant 9.99999997E-7 : f32
      %39 = vector.broadcast %cst_18 : f32 to vector<16x1xf32>
      %40 = arith.addf %36, %39 : vector<16x1xf32>
      %41 = math.rsqrt %40 : vector<16x1xf32>
      %42 = vector.broadcast %41 : vector<16x1xf32> to vector<16x32xf32>
      %43 = arith.mulf %38, %42 : vector<16x32xf32>
      %c0_19 = arith.constant 0 : index
      %c0_20 = arith.constant 0 : index
      %44 = vector.load %arg3[%c0_19, %c0_20] : memref<1x32xf32, #tpu.memory_space<vmem>>, vector<1x32xf32>
      %45 = vector.broadcast %44 : vector<1x32xf32> to vector<16x32xf32>
      %46 = arith.mulf %43, %45 : vector<16x32xf32>
      %c0_21 = arith.constant 0 : index
      %c0_22 = arith.constant 0 : index
      %47 = vector.load %arg4[%c0_21, %c0_22] : memref<1x32xf32, #tpu.memory_space<vmem>>, vector<1x32xf32>
      %48 = vector.broadcast %47 : vector<1x32xf32> to vector<16x32xf32>
      %49 = arith.addf %46, %48 : vector<16x32xf32>
      %50 = arith.truncf %49 : vector<16x32xf32> to vector<16x32xbf16>
      %c0_23 = arith.constant 0 : index
      %c0_24 = arith.constant 0 : index
      %51 = vector.load %arg8[%c0_23, %c0_24] : memref<16x32xbf16, #tpu.memory_space<vmem>>, vector<16x32xbf16>
      tpu.vector_store %arg8[%c0_23, %c0_24], %50 {strides = array<i32>} : memref<16x32xbf16, #tpu.memory_space<vmem>>, vector<16x32xbf16>,
    } else {
    }
    %c0 = arith.constant 0 : index
    %c0_1 = arith.constant 0 : index
    %3 = vector.load %arg8[%c0, %c0_1] : memref<16x32xbf16, #tpu.memory_space<vmem>>, vector<16x32xbf16>
    %c0_2 = arith.constant 0 : index
    %c0_3 = arith.constant 0 : index
    %4 = vector.load %arg5[%c0_2, %c0_3] : memref<32x128xbf16, #tpu.memory_space<vmem>>, vector<32x128xbf16>
    %cst = arith.constant dense<0.000000e+00> : vector<16x128xf32>
    %5 = tpu.matmul %3, %4, %cst {dimension_numbers = #tpu.dot_dimension_numbers<[1], [0], [0], [1], [0, 0, 1, 1], [], []>} : vector<16x32xbf16>, vector<32x128xbf16>, vector<16x128xf32> -> vector<16x128xf32>
    %c0_4 = arith.constant 0 : index
    %c0_5 = arith.constant 0 : index
    %6 = vector.load %arg6[%c0_4, %c0_5] : memref<1x128xf32, #tpu.memory_space<vmem>>, vector<1x128xf32>
    %7 = vector.broadcast %6 : vector<1x128xf32> to vector<16x128xf32>
    %8 = arith.addf %5, %7 : vector<16x128xf32>
    %cst_6 = arith.constant 5.000000e-01 : f32
    %9 = vector.broadcast %cst_6 : f32 to vector<16x128xf32>
    %10 = arith.mulf %9, %8 : vector<16x128xf32>
    %cst_7 = arith.constant 4.471500e-02 : f32
    %11 = vector.broadcast %cst_7 : f32 to vector<16x128xf32>
    %12 = arith.mulf %11, %8 : vector<16x128xf32>
    %13 = arith.mulf %12, %8 : vector<16x128xf32>
    %14 = arith.mulf %13, %8 : vector<16x128xf32>
    %15 = arith.addf %8, %14 : vector<16x128xf32>
    %cst_8 = arith.constant 0.797884583 : f32
    %16 = vector.broadcast %cst_8 : f32 to vector<16x128xf32>
    %17 = arith.mulf %16, %15 : vector<16x128xf32>
    %18 = math.tanh %17 : vector<16x128xf32>
    %cst_9 = arith.constant 1.000000e+00 : f32
    %19 = vector.broadcast %cst_9 : f32 to vector<16x128xf32>
    %20 = arith.addf %19, %18 : vector<16x128xf32>
    %21 = arith.mulf %10, %20 : vector<16x128xf32>
    %22 = arith.truncf %21 : vector<16x128xf32> to vector<16x128xbf16>
    %c0_10 = arith.constant 0 : index
    %c0_11 = arith.constant 0 : index
    %23 = vector.load %arg7[%c0_10, %c0_11] : memref<16x128xbf16, #tpu.memory_space<vmem>>, vector<16x128xbf16>
    tpu.vector_store %arg7[%c0_10, %c0_11], %22 {strides = array<i32>} : memref<16x128xbf16, #tpu.memory_space<vmem>>, vector<16x128xbf16>,
    return
  }
  func.func @transform_0(%arg0: i32, %arg1: i32) -> (i32, i32) {
    %c0_i32 = arith.constant 0 : i32
    %c0_i32_0 = arith.constant 0 : i32
    return %arg0, %c0_i32 : i32, i32
  }
  func.func @transform_1(%arg0: i32, %arg1: i32) -> (i32, i32) {
    %c0_i32 = arith.constant 0 : i32
    %c0_i32_0 = arith.constant 0 : i32
    %c0_i32_1 = arith.constant 0 : i32
    return %c0_i32, %c0_i32_0 : i32, i32
  }
  func.func @transform_2(%arg0: i32, %arg1: i32) -> (i32, i32) {
    %c0_i32 = arith.constant 0 : i32
    %c0_i32_0 = arith.constant 0 : i32
    %c0_i32_1 = arith.constant 0 : i32
    return %c0_i32, %c0_i32_0 : i32, i32
  }
  func.func @transform_3(%arg0: i32, %arg1: i32) -> (i32, i32) {
    %c0_i32 = arith.constant 0 : i32
    %c0_i32_0 = arith.constant 0 : i32
    return %c0_i32, %arg1 : i32, i32
  }
  func.func @transform_4(%arg0: i32, %arg1: i32) -> (i32, i32) {
    %c0_i32 = arith.constant 0 : i32
    %c0_i32_0 = arith.constant 0 : i32
    return %c0_i32, %arg1 : i32, i32
  }
  func.func @transform_5(%arg0: i32, %arg1: i32) -> (i32, i32) {
    %c0_i32 = arith.constant 0 : i32
    return %arg0, %arg1 : i32, i32
  }
}

module attributes {stable_mosaic.version = 11 : i64} {
  func.func @_matmul_kernel(%arg0: i32, %arg1: i32, %arg2: i32, %arg3: memref<16x128xbf16, #tpu.memory_space<vmem>>, %arg4: memref<128x32xbf16, #tpu.memory_space<vmem>>, %arg5: memref<1x32xf32, #tpu.memory_space<vmem>>, %arg6: memref<16x32xbf16, #tpu.memory_space<vmem>>, %arg7: memref<16x32xbf16, #tpu.memory_space<vmem>>, %arg8: memref<16x32xf32, #tpu.memory_space<vmem>>) attributes {dimension_semantics = [#tpu.dimension_semantics<parallel>, #tpu.dimension_semantics<parallel>, #tpu.dimension_semantics<arbitrary>], iteration_bounds = array<i64: 1, 1, 1>, scalar_prefetch = 0 : i64, scratch_operands = 1 : i64, tpu.core_type = #tpu.core_type<tc>, window_params = [{transform_indices = @transform_0, window_bounds = array<i64: 16, 128>}, {transform_indices = @transform_1, window_bounds = array<i64: 128, 32>}, {transform_indices = @transform_2, window_bounds = array<i64: 1, 32>}, {transform_indices = @transform_3, window_bounds = array<i64: 16, 32>}, {transform_indices = @transform_4, window_bounds = array<i64: 16, 32>}]} {
    %c0 = arith.constant 0 : index
    %c0_0 = arith.constant 0 : index
    %0 = vector.load %arg3[%c0, %c0_0] : memref<16x128xbf16, #tpu.memory_space<vmem>>, vector<16x128xbf16>
    %c0_1 = arith.constant 0 : index
    %c0_2 = arith.constant 0 : index
    %1 = vector.load %arg4[%c0_1, %c0_2] : memref<128x32xbf16, #tpu.memory_space<vmem>>, vector<128x32xbf16>
    %cst = arith.constant dense<0.000000e+00> : vector<16x32xf32>
    %2 = tpu.matmul %0, %1, %cst {dimension_numbers = #tpu.dot_dimension_numbers<[1], [0], [0], [1], [0, 0, 1, 1], [], []>} : vector<16x128xbf16>, vector<128x32xbf16>, vector<16x32xf32> -> vector<16x32xf32>
    %c0_i32 = arith.constant 0 : i32
    %3 = arith.cmpi eq, %arg2, %c0_i32 : i32
    %4 = arith.extui %3 : i1 to i32
    %c0_i32_3 = arith.constant 0 : i32
    %5 = arith.cmpi ne, %4, %c0_i32_3 : i32
    scf.if %5 {
      %c0_8 = arith.constant 0 : index
      %c0_9 = arith.constant 0 : index
      %12 = vector.load %arg8[%c0_8, %c0_9] : memref<16x32xf32, #tpu.memory_space<vmem>>, vector<16x32xf32>
      tpu.vector_store %arg8[%c0_8, %c0_9], %2 {strides = array<i32>} : memref<16x32xf32, #tpu.memory_space<vmem>>, vector<16x32xf32>,
    } else {
    }
    %c0_i32_4 = arith.constant 0 : i32
    %6 = arith.cmpi sgt, %arg2, %c0_i32_4 : i32
    %7 = arith.extui %6 : i1 to i32
    %c0_i32_5 = arith.constant 0 : i32
    %8 = arith.cmpi ne, %7, %c0_i32_5 : i32
    scf.if %8 {
      %c0_8 = arith.constant 0 : index
      %c0_9 = arith.constant 0 : index
      %12 = vector.load %arg8[%c0_8, %c0_9] : memref<16x32xf32, #tpu.memory_space<vmem>>, vector<16x32xf32>
      %13 = arith.addf %12, %2 : vector<16x32xf32>
      %c0_10 = arith.constant 0 : index
      %c0_11 = arith.constant 0 : index
      %14 = vector.load %arg8[%c0_10, %c0_11] : memref<16x32xf32, #tpu.memory_space<vmem>>, vector<16x32xf32>
      tpu.vector_store %arg8[%c0_10, %c0_11], %13 {strides = array<i32>} : memref<16x32xf32, #tpu.memory_space<vmem>>, vector<16x32xf32>,
    } else {
    }
    %c0_i32_6 = arith.constant 0 : i32
    %9 = arith.cmpi eq, %arg2, %c0_i32_6 : i32
    %10 = arith.extui %9 : i1 to i32
    %c0_i32_7 = arith.constant 0 : i32
    %11 = arith.cmpi ne, %10, %c0_i32_7 : i32
    scf.if %11 {
      %c0_8 = arith.constant 0 : index
      %c0_9 = arith.constant 0 : index
      %12 = vector.load %arg8[%c0_8, %c0_9] : memref<16x32xf32, #tpu.memory_space<vmem>>, vector<16x32xf32>
      %c0_10 = arith.constant 0 : index
      %c0_11 = arith.constant 0 : index
      %13 = vector.load %arg5[%c0_10, %c0_11] : memref<1x32xf32, #tpu.memory_space<vmem>>, vector<1x32xf32>
      %14 = vector.broadcast %13 : vector<1x32xf32> to vector<16x32xf32>
      %15 = arith.addf %12, %14 : vector<16x32xf32>
      %c0_12 = arith.constant 0 : index
      %c0_13 = arith.constant 0 : index
      %16 = vector.load %arg6[%c0_12, %c0_13] : memref<16x32xbf16, #tpu.memory_space<vmem>>, vector<16x32xbf16>
      %17 = arith.extf %16 : vector<16x32xbf16> to vector<16x32xf32>
      %18 = arith.addf %15, %17 : vector<16x32xf32>
      %19 = arith.truncf %18 : vector<16x32xf32> to vector<16x32xbf16>
      %c0_14 = arith.constant 0 : index
      %c0_15 = arith.constant 0 : index
      %20 = vector.load %arg7[%c0_14, %c0_15] : memref<16x32xbf16, #tpu.memory_space<vmem>>, vector<16x32xbf16>
      tpu.vector_store %arg7[%c0_14, %c0_15], %19 {strides = array<i32>} : memref<16x32xbf16, #tpu.memory_space<vmem>>, vector<16x32xbf16>,
    } else {
    }
    return
  }
  func.func @transform_0(%arg0: i32, %arg1: i32, %arg2: i32) -> (i32, i32) {
    %c0_i32 = arith.constant 0 : i32
    return %arg0, %arg2 : i32, i32
  }
  func.func @transform_1(%arg0: i32, %arg1: i32, %arg2: i32) -> (i32, i32) {
    %c0_i32 = arith.constant 0 : i32
    return %arg2, %arg1 : i32, i32
  }
  func.func @transform_2(%arg0: i32, %arg1: i32, %arg2: i32) -> (i32, i32) {
    %c0_i32 = arith.constant 0 : i32
    %c0_i32_0 = arith.constant 0 : i32
    return %c0_i32, %arg1 : i32, i32
  }
  func.func @transform_3(%arg0: i32, %arg1: i32, %arg2: i32) -> (i32, i32) {
    %c0_i32 = arith.constant 0 : i32
    return %arg0, %arg1 : i32, i32
  }
  func.func @transform_4(%arg0: i32, %arg1: i32, %arg2: i32) -> (i32, i32) {
    %c0_i32 = arith.constant 0 : i32
    return %arg0, %arg1 : i32, i32
  }
}

</mosaic_0001>

<bundles_post_ra>
// kernel: classification_multimodal_forward.23
= control target key start
LH: loop header
LB: loop body
LE: loop exit
PB: predicated region body
PF: predicated region fallthrough
CT: control target
= control target key end

     0   :  { %vm29_vm0 = vcmask 261120   ;;  %v182_v5 = vmov 32.0   ;;  %vm95_vm6 = vcmask 257024   ;;  %vm145_vm9 = vcmask 781312   ;;  %s242_s0 = inlined_call_operand.vmem [shape: bf16[16,32], index: 0, kind: input, shape index: {}]   ;;  %s243_s1 = inlined_call_operand.vmem [shape: f32[1,32], index: 1, kind: input, shape index: {}]   ;;  %s244_s2 = inlined_call_operand.vmem [shape: f32[1,32], index: 2, kind: input, shape index: {}]   ;;  %s245_s4 = inlined_call_operand.vmem [shape: f32[1,96], index: 4, kind: input, shape index: {}]   ;;  %s246_s3 = inlined_call_operand.vmem [shape: bf16[32,96], index: 3, kind: input, shape index: {}]   ;;  %s247_s5 = inlined_call_operand.vmem [shape: bf16[16,96], index: 5, kind: output, shape index: {}]  }
   0x1   :  { %v169_v0 = vld [vmem:[%s242_s0] sm:$0xff]   ;;  %176 = vrcp.f32 %v182_v5  ;;  %v167_v25 = vld [vmem:[%s246_s3 + $0x8] sm:$0xff] }
   0x2   :  { %v170_v1 = vunpack.c.l.bf16 %v169_v0  ;;  %v171_v3 = vunpack.c.h.bf16 %v169_v0  ;;  %135 = vmatpush.bf16.msra.mxu0 %v167_v25  ;;  %v166_v28 = vld [vmem:[%s246_s3] sm:$0xff] }
   0x3   :  { %v173_v38 = vld [vmem:[%s243_s1] ss:$0 sm:$0xff] }
   0x4   :  { %v30_v2 = vsel %vm29_vm0, %v170_v1, 0.0  ;;  %v33_v4 = vsel %vm29_vm0, %v171_v3, 0.0  ;;  %v174_v41 = vld [vmem:[%s244_s2] ss:$0 sm:$0xff] }
   0x5   :  { %31 = vadd.xlane.f32.xlu0 %v30_v2  ;;  %v175_v55 = vld [vmem:[%s245_s4] ss:$0 sm:$0xff] }
   0x6   :  { %136 = vmatpush.bf16.msra.mxu0 %v166_v28 }
   0x7   :  { %v177_v6 = vpop.eup %176 }
   0x8   :  { %v37_v7 = vmul.f32 32.0, %v177_v6  ;;  %vm41_vm1 = vweird.f32 %v177_v6 }
   0xa   :  { %v38_v8 = vsub.f32 1.0, %v37_v7 }
   0xc   :  { %v39_v9 = vmul.f32 %v177_v6, %v38_v8 }
   0xd   :  { %34 = vadd.xlane.f32.xlu0 %v33_v4 }
   0xe   :  { %v40_v10 = vadd.f32 %v177_v6, %v39_v9 }
  0x10   :  { %v42_v11 = vsel %vm41_vm1, %v177_v6, %v40_v10 }
  0x78   :  { %v32_v12 = vpop.xlane.xlu0 %31 }
  0x79   :  { %v43_v13 = vmul.f32 %v42_v11, %v32_v12 }
  0x7b   :  { %v45_v14 = vsub.f32 %v170_v1, %v43_v13 }
  0x7d   :  { %v47_v15 = vmul.f32 %v45_v14, %v45_v14 }
  0x7f   :  { %v49_v16 = vsel %vm29_vm0, %v47_v15, 0.0 }
  0x80   :  { %50 = vadd.xlane.f32.xlu1 %v49_v16  ;;  %v35_v17 = vpop.xlane.xlu0 %34 }
  0x81   :  { %v44_v18 = vmul.f32 %v42_v11, %v35_v17 }
  0x83   :  { %v46_v19 = vsub.f32 %v171_v3, %v44_v18 }
  0x85   :  { %v48_v20 = vmul.f32 %v46_v19, %v46_v19 }
  0x87   :  { %v52_v21 = vsel %vm29_vm0, %v48_v20, 0.0 }
  0x88   :  { %53 = vadd.xlane.f32.xlu1 %v52_v21 }
  0xf3   :  { %v51_v22 = vpop.xlane.xlu1 %50 }
  0xf4   :  { %v55_v23 = vmul.f32 %v51_v22, %v42_v11 }
  0xf6   :  { %v57_v24 = vadd.f32 1e-06, %v55_v23 }
  0xf8   :  { %178 = vrsqrt.f32 %v57_v24  ;;  %vm65_vm3 = vweird.f32 %v57_v24 }
  0xfb   :  { %v54_v26 = vpop.xlane.xlu1 %53 }
  0xfc   :  { %v56_v27 = vmul.f32 %v54_v26, %v42_v11 }
  0xfe   :  { %v179_v29 = vpop.eup %178  ;;  %v58_v30 = vadd.f32 1e-06, %v56_v27 }
  0xff   :  { %v60_v31 = vmul.f32 %v179_v29, %v57_v24  ;;  %vm66_vm2 = vweird.f32 %v179_v29 }
 0x100   :  { %180 = vrsqrt.f32 %v58_v30  ;;  %vm67_vm4 = vmor %vm65_vm3, %vm66_vm2  ;;  %vm75_vm7 = vweird.f32 %v58_v30 }
 0x101   :  { %v61_v32 = vmul.f32 %v179_v29, %v60_v31 }
 0x103   :  { %v62_v33 = vmul.f32 0.5, %v61_v32 }
 0x105   :  { %v63_v34 = vsub.f32 1.5, %v62_v33 }
 0x106   :  { %v181_v35 = vpop.eup %180 }
 0x107   :  { %v64_v36 = vmul.f32 %v179_v29, %v63_v34  ;;  %v70_v37 = vmul.f32 %v181_v35, %v58_v30  ;;  %vm76_vm5 = vweird.f32 %v181_v35 }
 0x108   :  { %vm77_vm8 = vmor %vm75_vm7, %vm76_vm5 }
 0x109   :  { %v68_v39 = vsel %vm67_vm4, %v179_v29, %v64_v36  ;;  %v71_v40 = vmul.f32 %v181_v35, %v70_v37 }
 0x10a   :  { %v79_v42 = vmul.f32 %v68_v39, %v45_v14 }
 0x10b   :  { %v72_v43 = vmul.f32 0.5, %v71_v40 }
 0x10c   :  { %v85_v44 = vmul.f32 %v173_v38, %v79_v42 }
 0x10d   :  { %v73_v45 = vsub.f32 1.5, %v72_v43 }
 0x10e   :  { %v91_v46 = vadd.f32 %v174_v41, %v85_v44 }
 0x10f   :  { %v74_v47 = vmul.f32 %v181_v35, %v73_v45 }
 0x110   :  { %v93_v48 = vpack.c.bf16 %v91_v46, %v91_v46 }
 0x111   :  { %v78_v49 = vsel %vm77_vm8, %v181_v35, %v74_v47 }
 0x112   :  { %96 = vst.msk [vmem:[#allocation2] sm:$0xf] %vm95_vm6, %v93_v48  ;;  %v80_v50 = vmul.f32 %v78_v49, %v46_v19 }
 0x114   :  { %v86_v51 = vmul.f32 %v173_v38, %v80_v50 }
 0x116   :  { %v92_v52 = vadd.f32 %v174_v41, %v86_v51 }
 0x118   :  { %v94_v53 = vpack.c.bf16 %v92_v52, %v92_v52 }
 0x11a   :  { %97 = vst.msk [vmem:[#allocation2 + $0x4] sm:$0xf] %vm95_vm6, %v94_v53 }
 0x121   :  { %v165_v54 = vld [vmem:[#allocation2] sm:$0xff] }
 0x122   :  { %164 = vmatmul.msk.bf16.vlgmr.msra.gmra.mxu0 %vm29_vm0, %v165_v54 }
 0x19f   :  { %v138_v56 = vpop.f32.mrf.mxu0 }
 0x1a0   :  { %v139_v57 = vadd.f32 %v175_v55, %v138_v56 }
 0x1a2   :  { %v143_v58 = vpack.c.bf16 %v139_v57, %v139_v57 }
 0x1a4   :  { %146 = vst.msk [vmem:[%s247_s5] sm:$0xf] %vm145_vm9, %v143_v58 }
 0x1a7   :  { %v140_v59 = vpop.f32.mrf.mxu0 }
 0x1a8   :  { %v141_v60 = vadd.f32 %v175_v55, %v140_v59 }
 0x1aa   :  { %v144_v61 = vpack.c.bf16 %v141_v60, %v141_v60 }
 0x1ac   :  { %147 = vst.msk [vmem:[%s247_s5 + $0x4] sm:$0xf] %vm145_vm9, %v144_v61 }

// kernel: classification_multimodal_forward.25
= control target key start
LH: loop header
LB: loop body
LE: loop exit
PB: predicated region body
PF: predicated region fallthrough
CT: control target
= control target key end

     0   :  { %vm41_vm0 = vcmask 261120   ;;  %vm94_vm1 = vcmask 257024   ;;  %s168_s1 = inlined_call_operand.vmem [shape: bf16[32,32], index: 1, kind: input, shape index: {}]   ;;  %s169_s2 = inlined_call_operand.vmem [shape: f32[1,32], index: 2, kind: input, shape index: {}]   ;;  %s170_s0 = inlined_call_operand.vmem [shape: bf16[16,32], index: 0, kind: input, shape index: {}]   ;;  %s171_s3 = inlined_call_operand.vmem [shape: bf16[16,32], index: 3, kind: input, shape index: {}]   ;;  %s172_s4 = inlined_call_operand.vmem [shape: bf16[16,32], index: 4, kind: output, shape index: {}]  }
   0x1   :  { %v116_v0 = vld [vmem:[%s168_s1 + $0x8] sm:$0xff]  ;;  %v115_v1 = vld [vmem:[%s168_s1] sm:$0xff] }
   0x2   :  { %51 = vmatpush.bf16.msra.mxu0 %v116_v0  ;;  %v114_v2 = vld [vmem:[%s170_s0] sm:$0xff] }
   0x3   :  { %v118_v4 = vld [vmem:[%s171_s3] sm:$0xff]  }
   0x4   :  { %v121_v5 = vld [vmem:[%s169_s2] ss:$0 sm:$0xff]  ;;  %v119_v6 = vunpack.c.l.bf16 %v118_v4  ;;  %v120_v12 = vunpack.c.h.bf16 %v118_v4 }
   0x6   :  { %52 = vmatpush.bf16.msra.mxu0 %v115_v1 }
   0x9   :  { %113 = vmatmul.msk.bf16.vlgmr.msra.gmra.mxu0 %vm41_vm0, %v114_v2 }
  0x86   :  { %v54_v3 = vpop.f32.mrf.mxu0 }
  0x87   :  { %63 = vst.msk [vmem:[#allocation2] sm:$0xff] %vm41_vm0, %v54_v3 }
  0x8e   :  { %v78_v7 = vld [vmem:[#allocation2] sm:$0xff]  ;;  %v56_v8 = vpop.f32.mrf.mxu0 }
  0x8f   :  { %v84_v9 = vadd.f32 %v121_v5, %v78_v7  ;;  %64 = vst.msk [vmem:[#allocation2 + $0x8] sm:$0xff] %vm41_vm0, %v56_v8 }
  0x91   :  { %v90_v10 = vadd.f32 %v119_v6, %v84_v9 }
  0x93   :  { %v92_v11 = vpack.c.bf16 %v90_v10, %v90_v10 }
  0x95   :  { %95 = vst.msk [vmem:[%s172_s4] sm:$0xf] %vm94_vm1, %v92_v11 }
  0x96   :  { %v79_v13 = vld [vmem:[#allocation2 + $0x8] sm:$0xff] }
  0x97   :  { %v85_v14 = vadd.f32 %v121_v5, %v79_v13 }
  0x99   :  { %v91_v15 = vadd.f32 %v120_v12, %v85_v14 }
  0x9b   :  { %v93_v16 = vpack.c.bf16 %v91_v15, %v91_v15 }
  0x9d   :  { %96 = vst.msk [vmem:[%s172_s4 + $0x4] sm:$0xf] %vm94_vm1, %v93_v16 }

// kernel: classification_multimodal_forward.22
= control target key start
LH: loop header
LB: loop body
LE: loop exit
PB: predicated region body
PF: predicated region fallthrough
CT: control target
= control target key end

     0   :  { %vm118_vm0 = vcmask 523264   ;;  %vm152_vm1 = vcmask 261120   ;;  %s304_s1 = inlined_call_operand.vmem [shape: bf16[192,32], index: 1, kind: input, shape index: {}]   ;;  %s305_s0 = inlined_call_operand.vmem [shape: bf16[8,192], index: 0, kind: input, shape index: {}]   ;;  %s306_s2 = inlined_call_operand.vmem [shape: f32[1,32], index: 2, kind: input, shape index: {}]   ;;  %s307_s3 = inlined_call_operand.vmem [shape: f32[8,32], index: 3, kind: output, shape index: {}]  }
   0x1   :  { %v233_v0 = vld [vmem:[%s304_s1 + $0x38] sm:$0xff]  ;;  %v232_v2 = vld [vmem:[%s304_s1 + $0x30] sm:$0xff]  ;;  %v231_v4 = vld [vmem:[%s304_s1 + $0x28] sm:$0xff] }
   0x2   :  { %v237_v1 = vld [vmem:[%s304_s1 + $0x58] sm:$0xff]  ;;  %122 = vmatpush.bf16.msra.mxu0 %v233_v0  ;;  %v236_v3 = vld [vmem:[%s304_s1 + $0x50] sm:$0xff]  ;;  %v235_v5 = vld [vmem:[%s304_s1 + $0x48] sm:$0xff] }
   0x3   :  { %139 = vmatpush.bf16.msra.mxu1 %v237_v1  ;;  %v15_v6 = vld [vmem:[%s305_s0] sm:$0xff]  ;;  %v229_v10 = vld [vmem:[%s304_s1 + $0x18] sm:$0xff]  ;;  %v228_v12 = vld [vmem:[%s304_s1 + $0x10] sm:$0xff] }
   0x4   :  { %v230_v7 = vld [vmem:[%s304_s1 + $0x20] sm:$0xff]  ;;  %v42_v8 = vunpack.c.h.b16 %v15_v6  ;;  %v227_v13 = vld [vmem:[%s304_s1 + $0x8] sm:$0xff]  ;;  %v41_v14 = vunpack.c.l.b16 %v15_v6 }
   0x5   :  { %v234_v9 = vld [vmem:[%s304_s1 + $0x40] sm:$0xff] }
   0x6   :  { %123 = vmatpush.bf16.msra.mxu0 %v232_v2  ;;  %v44_v11 = vpack.c.b16 %v42_v8, %v42_v8  ;;  %v226_v15 = vld [vmem:[%s304_s1] sm:$0xff]  ;;  %v43_v16 = vpack.c.b16 %v41_v14, %v41_v14 }
   0x7   :  { %140 = vmatpush.bf16.msra.mxu1 %v236_v3  ;;  %v238_v21 = vld [vmem:[%s306_s2] ss:$0 sm:$0xff] }
   0xa   :  { %124 = vmatpush.bf16.msra.mxu0 %v231_v4 }
   0xb   :  { %141 = vmatpush.bf16.msra.mxu1 %v235_v5 }
   0xe   :  { %125 = vmatpush.bf16.msra.mxu0 %v230_v7 }
   0xf   :  { %142 = vmatpush.bf16.msra.mxu1 %v234_v9 }
  0x12   :  { %126 = vmatpush.bf16.msra.mxu0 %v229_v10  ;;  %225 = vmatmul.msk.bf16.vlgmr.msra.gmra.mxu1 %vm118_vm0, %v44_v11 }
  0x16   :  { %127 = vmatpush.bf16.msra.mxu0 %v228_v12 }
  0x1a   :  { %128 = vmatpush.bf16.msra.mxu0 %v227_v13 }
  0x1e   :  { %129 = vmatpush.bf16.msra.mxu0 %v226_v15 }
  0x21   :  { %130 = vmatmul.bf16.vlgmr.msra.gmra.mxu0 %v43_v16 }
  0x8f   :  { %v144_v17 = vpop.f32.mrf.mxu1 }
  0x97   :  { %v146_v18 = vpop.f32.mrf.mxu1 }
  0x9e   :  { %v131_v19 = vpop.f32.mrf.mxu0 }
  0x9f   :  { %v145_v20 = vadd.f32 %v144_v17, %v131_v19 }
  0xa1   :  { %153 = vst.msk [vmem:[#allocation2] sm:$0xff] %vm152_vm1, %v145_v20 }
  0xa6   :  { %v133_v22 = vpop.f32.mrf.mxu0 }
  0xa8   :  { %v165_v23 = vld [vmem:[#allocation2] sm:$0xff] }
  0xa9   :  { %v170_v24 = vadd.f32 %v238_v21, %v165_v23 }
  0xab   :  { %172 = vst.msk [vmem:[%s307_s3] sm:$0xff] %vm152_vm1, %v170_v24 }

// kernel: classification_multimodal_forward.24
= control target key start
LH: loop header
LB: loop body
LE: loop exit
PB: predicated region body
PF: predicated region fallthrough
CT: control target
= control target key end

     0   :  { %s524_s6 = smov 0   ;;  %s599_s0 = inlined_call_operand.vmem [shape: bf16[2,8,96], index: 0, kind: input, shape index: {}]   ;;  %s600_s1 = inlined_call_operand.vmem [shape: bf16[2,8,32], index: 1, kind: output, shape index: {}]  }
   0x1 LB: > { %s437_s7 = sadd.s32 4294967295, %s498_s6   ;;  %p441_p0 = scmp.ge.s32.totalorder %s498_s6, 1  ;;  %s498_s6 = sphi %s524_s6, %s11_s6  }
   0x2   : > { %p86_p1 = scmp.lt.s32.totalorder %s498_s6, 3 }
   0x4   : > { %p87_p2 = pnand %p441_p0, %p86_p1 }
   0x5   : > { %p104_p3 = scmp.lt.s32.totalorder (!%p87_p2), %s437_s7, 1  ;;  %s500_s12 = smov (!%p87_p2), 96  }
   0x6   : > { %90 = sbr.rel (%p87_p2) target bundleno = 1194 (0x4aa), region = 24  ;;  %s501_s13 = smov (!%p87_p2), 88  }
   0x7   : > { %s502_s14 = smov (!%p87_p2), 120   ;;  %s503_s15 = smov (!%p87_p2), 64  }
   0x8   : > { %s504_s16 = smov (!%p87_p2), 80   ;;  %s505_s17 = smov (!%p87_p2), 72  }
   0x9   : > { %s506_s18 = smov (!%p87_p2), 112   ;;  %s507_s19 = smov (!%p87_p2), 104  }
   0xa   : > { %s508_s20 = smov (!%p87_p2), 56   ;;  %s509_s21 = smov (!%p87_p2), 40  }
   0xb   : > { %s602_s7 = smov (!%p104_p3, %s437_s7), 1  ;;  %vm122_vm0 = vcmask 64512   ;;  %v113_v17 = vlaneseq  ;;  %vm160_vm2 = vcmask 1043456   ;;  %vm178_vm3 = vcmask 60416   ;;  %s510_s25 = smov 48  }
   0xc   : > { %s442_s8 = sshll.u32 %s602_s7, 2  ;;  %s511_s26 = smov 8   ;;  %vm246_vm4 = vcmask 126016   ;;  %vm314_vm5 = vcmask 191616   ;;  %vm382_vm6 = vcmask 257216  }
   0xd   : > { %s107_s11 = scalar_lea.vmem %s599_s0, %s442_s8  ;;  %v551_v18 = vand.u32 127, %v113_v17  ;;  %s577_s24 = scalar_lea.vmem %s600_s1, %s442_s8 }
   0xe   : > { %v116_v0 = vld [vmem:[%s107_s11] sm:$0xf]  ;;  %s512_s27 = smov 16   ;;  %s513_s28 = smov 24  }
   0xf   : > { %v118_v1 = vunpack.c.l.b16 %v116_v0  ;;  %v180_v3 = vld [vmem:[%s107_s11] sm:$0xf]  ;;  %vm115_vm1 = vcmp.lt.s32.totalorder %v551_v18, 5 }
  0x10   : > { %v182_v4 = vunpack.c.l.b16 %v180_v3  ;;  %v248_v8 = vld [vmem:[%s107_s11] sm:$0xf] }
  0x11   : > { %v119_v2 = vpack.c.b16 %v118_v1, %v118_v1  ;;  %v250_v10 = vunpack.c.l.b16 %v248_v8  ;;  %v316_v12 = vld [vmem:[%s107_s11] sm:$0xf] }
  0x12   : > { %v540_v5 = vpack.c.b16 %v182_v4, %v182_v4  ;;  %v318_v14 = vunpack.c.l.b16 %v316_v12 }
  0x13   : > { %120 = vrot.lane.b32.xlu0 %v119_v2, %s500_s12  ;;  %v547_v13 = vpack.c.b16 %v250_v10, %v250_v10 }
  0x14   : > { %186 = vrot.lane.b32.xlu1 %v540_v5, %s501_s13  ;;  %184 = vrot.lane.b32.xlu2 %v540_v5, %s502_s14  ;;  %v319_v16 = vpack.c.b16 %v318_v14, %v318_v14 }
  0x1c   : > { %155 = vrot.lane.b32.xlu2 %v119_v2, %s503_s15 }
  0x24   : > { %254 = vrot.lane.b32.xlu2 %v547_v13, %s504_s16 }
  0x2c   : > { %322 = vrot.lane.b32.xlu2 %v319_v16, %s505_s17 }
  0x34   : > { %252 = vrot.lane.b32.xlu2 %v547_v13, %s506_s18 }
  0x3c   : > { %320 = vrot.lane.b32.xlu2 %v319_v16, %s507_s19 }
  0x6e   : > { %v185_v15 = vpop.permute.xlu2 %184 }
  0x76   : > { %v156_v23 = vpop.permute.xlu2 %155 }
  0x77   : > { %v162_v28 = vsel %vm160_vm2, %v156_v23, 0 }
  0x78   : > { %171 = vmatpush.bf16.msra.mxu1 %v162_v28 }
  0x7e   : > { %v255_v24 = vpop.permute.xlu2 %254 }
  0x7f   : > { %v260_v26 = vsel %vm122_vm0, %v255_v24, 0 }
  0x80   : > { %269 = vmatpush.bf16.xpose.msrb.mxu1 %v260_v26 }
  0x85   : > { %v121_v6 = vpop.permute.xlu0 %120 }
  0x86   : > { %v127_v7 = vsel %vm122_vm0, %v121_v6, 0  ;;  %v187_v9 = vpop.permute.xlu1 %186  ;;  %v323_v25 = vpop.permute.xlu2 %322 }
  0x87   : > { %136 = vmatpush.bf16.xpose.msra.mxu0 %v127_v7  ;;  %v192_v11 = vsel %vm122_vm0, %v187_v9, 0  ;;  %v328_v27 = vsel %vm122_vm0, %v323_v25, 0 }
  0x88   : > { %201 = vmatpush.bf16.xpose.msra.mxu2 %v192_v11 }
  0x8e   : > { %444 = vmatmul.msk.bf16.vlgmr.msra.gmra.mxu0 %vm122_vm0, %v116_v0  ;;  %v253_v29 = vpop.permute.xlu2 %252 }
  0x8f   : > { %446 = vmatmul.msk.bf16.vlgmr.msra.gmra.mxu2 %vm122_vm0, %v185_v15  ;;  %337 = vmatpush.bf16.xpose.msrb.mxu0 %v328_v27 }
  0x96   : > { %v321_v30 = vpop.permute.xlu2 %320 }
  0x9e   : > { %450 = vmatmul.msk.bf16.vlgmr.msrb.gmra.mxu0 %vm122_vm0, %v321_v30 }
 0x10b   : > { %v138_v19 = vpop.f32.mrf.mxu0 }
 0x10c   : > { %v142_v20 = vsel %vm115_vm1, %v138_v19, -1e+30 }
 0x10d   : > { %v143_v21 = vsel %vm122_vm0, %v142_v20, -inf }
 0x10e   : > { %144 = vmax.xlane.f32.xlu0 %v143_v21 }
 0x112   : > { %v203_v31 = vpop.f32.mrf.mxu2 }
 0x113   : > { %v140_v22 = vpop.f32.mrf.mxu0  ;;  %v207_v32 = vsel %vm115_vm1, %v203_v31, -1e+30 }
 0x114   : > { %v208_v34 = vsel %vm122_vm0, %v207_v32, -inf }
 0x115   : > { %209 = vmax.xlane.f32.xlu2 %v208_v34 }
 0x11a   : > { %v205_v37 = vpop.f32.mrf.mxu2 }
 0x11b   : > { %v339_v40 = vpop.f32.mrf.mxu0 }
 0x11c   : > { %v343_v41 = vsel %vm115_vm1, %v339_v40, -1e+30 }
 0x11d   : > { %v344_v42 = vsel %vm122_vm0, %v343_v41, -inf }
 0x123   : > { %v341_v44 = vpop.f32.mrf.mxu0 }
 0x181   : > { %v145_v33 = vpop.xlane.xlu0 %144 }
 0x182   : > { %v146_v35 = vsub.f32 %v142_v20, %v145_v33 }
 0x184   : > { %v147_v36 = vmul.f32 1.442695, %v146_v35 }
 0x186   : > { %476 = vpow2.f32 %v147_v36 }
 0x188   : > { %v210_v50 = vpop.xlane.xlu2 %209 }
 0x189   : > { %v211_v52 = vsub.f32 %v207_v32, %v210_v50 }
 0x18b   : > { %v212_v53 = vmul.f32 1.442695, %v211_v52 }
 0x18c   : > { %v477_v38 = vpop.eup %476 }
 0x18d   : > { %v149_v39 = vsel %vm122_vm0, %v477_v38, 0.0 }
 0x18e   : > { %150 = vadd.xlane.f32.xlu1 %v149_v39 }
 0x196   : > { %345 = vmax.xlane.f32.xlu1 %v344_v42 }
 0x1af   : > { %220 = vrot.lane.b32.xlu1 %v540_v5, %s508_s20 }
 0x1b7   : > { %356 = vrot.lane.b32.xlu1 %v319_v16, %s509_s21 }
 0x201   : > { %v151_v43 = vpop.xlane.xlu1 %150 }
 0x202   : > { %478 = vrcp.f32 %v151_v43 }
 0x203   : > { %480 = vpow2.f32 %v212_v53 }
 0x208   : > { %v479_v45 = vpop.eup %478 }
 0x209   : > { %v153_v46 = vmul.f32 %v479_v45, %v477_v38  ;;  %v346_v54 = vpop.xlane.xlu1 %345  ;;  %v481_v60 = vpop.eup %480 }
 0x20a   : > { %v347_v56 = vsub.f32 %v343_v41, %v346_v54  ;;  %v214_v62 = vsel %vm122_vm0, %v481_v60, 0.0 }
 0x20b   : > { %v154_v47 = vpack.c.bf16 %v153_v46, %v153_v46 }
 0x20c   : > { %v348_v59 = vmul.f32 1.442695, %v347_v56 }
 0x20d   : > { %445 = vmatmul.msk.bf16.vlgmr.msra.gmra.mxu1 %vm122_vm0, %v154_v47 }
 0x20e   : > { %482 = vpow2.f32 %v348_v59 }
 0x214   : > { %v483_v63 = vpop.eup %482 }
 0x215   : > { %v350_v0 = vsel %vm122_vm0, %v483_v63, 0.0 }
 0x21d   : > { %448 = vmatmul.msk.bf16.vlgmr.msrb.gmra.mxu1 %vm122_vm0, %v253_v29 }
 0x221   : > { %v221_v1 = vpop.permute.xlu1 %220 }
 0x222   : > { %v226_v2 = vsel %vm160_vm2, %v221_v1, 0 }
 0x223   : > { %235 = vmatpush.bf16.msra.mxu3 %v226_v2 }
 0x229   : > { %v357_v3 = vpop.permute.xlu1 %356 }
 0x22a   : > { %v362_v4 = vsel %vm160_vm2, %v357_v3, 0 }
 0x22b   : > { %371 = vmatpush.bf16.msrb.mxu2 %v362_v4 }
 0x28a   : > { %v173_v48 = vpop.f32.mrf.mxu1 }
 0x28b   : > { %v177_v49 = vpack.c.bf16 %v173_v48, %v173_v48 }
 0x28d   : > { %179 = vst.msk [vmem:[%s577_s24] sm:$0xf] %vm178_vm3, %v177_v49 }
 0x292   : > { %v175_v51 = vpop.f32.mrf.mxu1 }
 0x29a   : > { %v271_v55 = vpop.f32.mrf.mxu1 }
 0x29b   : > { %v275_v57 = vsel %vm115_vm1, %v271_v55, -1e+30 }
 0x29c   : > { %v276_v58 = vsel %vm122_vm0, %v275_v57, -inf }
 0x29d   : > { %277 = vmax.xlane.f32.xlu0 %v276_v58 }
 0x2a2   : > { %v273_v61 = vpop.f32.mrf.mxu1 }
 0x2a5   : > { %215 = vadd.xlane.f32.xlu0 %v214_v62 }
 0x2ad   : > { %351 = vadd.xlane.f32.xlu0 %v350_v0 }
 0x310   : > { %v278_v5 = vpop.xlane.xlu0 %277 }
 0x311   : > { %v279_v6 = vsub.f32 %v275_v57, %v278_v5 }
 0x313   : > { %v280_v7 = vmul.f32 1.442695, %v279_v6 }
 0x315   : > { %484 = vpow2.f32 %v280_v7 }
 0x318   : > { %v216_v8 = vpop.xlane.xlu0 %215 }
 0x319   : > { %486 = vrcp.f32 %v216_v8 }
 0x31b   : > { %v485_v9 = vpop.eup %484 }
 0x31c   : > { %v282_v10 = vsel %vm122_vm0, %v485_v9, 0.0 }
 0x31d   : > { %283 = vadd.xlane.f32.xlu0 %v282_v10 }
 0x31f   : > { %v487_v11 = vpop.eup %486 }
 0x320   : > { %v352_v12 = vpop.xlane.xlu0 %351  ;;  %v218_v14 = vmul.f32 %v487_v11, %v481_v60 }
 0x321   : > { %488 = vrcp.f32 %v352_v12 }
 0x322   : > { %v219_v15 = vpack.c.bf16 %v218_v14, %v218_v14 }
 0x324   : > { %447 = vmatmul.msk.bf16.vlgmr.msra.gmra.mxu3 %vm122_vm0, %v219_v15 }
 0x327   : > { %v489_v16 = vpop.eup %488 }
 0x328   : > { %v354_v17 = vmul.f32 %v489_v16, %v483_v63 }
 0x32a   : > { %v355_v18 = vpack.c.bf16 %v354_v17, %v354_v17 }
 0x32c   : > { %451 = vmatmul.msk.bf16.vlgmr.msrb.gmra.mxu2 %vm122_vm0, %v355_v18 }
 0x331   : > { %288 = vrot.lane.b32.xlu0 %v547_v13, %s510_s25 }
 0x390   : > { %v284_v19 = vpop.xlane.xlu0 %283 }
 0x391   : > { %490 = vrcp.f32 %v284_v19 }
 0x397   : > { %v491_v20 = vpop.eup %490 }
 0x398   : > { %v286_v21 = vmul.f32 %v491_v20, %v485_v9 }
 0x39a   : > { %v287_v24 = vpack.c.bf16 %v286_v21, %v286_v21 }
 0x3a3   : > { %v289_v22 = vpop.permute.xlu0 %288 }
 0x3a4   : > { %v294_v23 = vsel %vm160_vm2, %v289_v22, 0 }
 0x3a5   : > { %303 = vmatpush.bf16.msrb.mxu3 %v294_v23 }
 0x3a7   : > { %v237_v25 = vpop.f32.mrf.mxu3 }
 0x3a8   : > { %v241_v26 = vpack.c.bf16 %v237_v25, %v237_v25  ;;  %449 = vmatmul.msk.bf16.vlgmr.msrb.gmra.mxu3 %vm122_vm0, %v287_v24 }
 0x3aa   : > { %243 = vrot.lane.b32.xlu2 %v241_v26, %s511_s26 }
 0x3af   : > { %v239_v27 = vpop.f32.mrf.mxu3  ;;  %v373_v28 = vpop.f32.mrf.mxu2 }
 0x3b0   : > { %v377_v33 = vpack.c.bf16 %v373_v28, %v373_v28 }
 0x3b7   : > { %v375_v13 = vpop.f32.mrf.mxu2 }
 0x404   : > { %v244_v29 = vpop.permute.xlu2 %243 }
 0x405   : > { %247 = vst.msk [vmem:[%s577_s24] sm:$0xf] %vm246_vm4, %v244_v29 }
 0x42b   : > { %v305_v30 = vpop.f32.mrf.mxu3 }
 0x42c   : > { %v309_v31 = vpack.c.bf16 %v305_v30, %v305_v30 }
 0x42e   : > { %311 = vrot.lane.b32.xlu1 %v309_v31, %s512_s27 }
 0x433   : > { %v307_v32 = vpop.f32.mrf.mxu3 }
 0x436   : > { %379 = vrot.lane.b32.xlu1 %v377_v33, %s513_s28 }
 0x4a0   : > { %v312_v34 = vpop.permute.xlu1 %311 }
 0x4a1   : > { %315 = vst.msk [vmem:[%s577_s24] sm:$0xf] %vm314_vm5, %v312_v34 }
 0x4a8   : > { %v380_v35 = vpop.permute.xlu1 %379 }
 0x4a9   : > { %383 = vst.msk [vmem:[%s577_s24] sm:$0xf] %vm382_vm6, %v380_v35 }
 0x4aa PF: > { %s11_s6 = sadd.s32 1, %s498_s6  }
 0x4ab   : > { %p8_p4 = scmp.ge.s32.totalorder %s11_s6, 4  }
 0x4ad   :  { %10 = sbr.rel (!%p8_p4) target bundleno = 1 (0x1), region = 54 }

// kernel: classification_multimodal_forward.27
= control target key start
LH: loop header
LB: loop body
LE: loop exit
PB: predicated region body
PF: predicated region fallthrough
CT: control target
= control target key end

     0   :  { %vm107_vm0 = vcmask 261120   ;;  %vm140_vm1 = vcmask 257024   ;;  %s261_s1 = inlined_call_operand.vmem [shape: bf16[128,32], index: 1, kind: input, shape index: {}]   ;;  %s262_s2 = inlined_call_operand.vmem [shape: f32[1,32], index: 2, kind: input, shape index: {}]   ;;  %s263_s0 = inlined_call_operand.vmem [shape: bf16[16,128], index: 0, kind: input, shape index: {}]   ;;  %s264_s3 = inlined_call_operand.vmem [shape: bf16[16,32], index: 3, kind: input, shape index: {}]   ;;  %s265_s4 = inlined_call_operand.vmem [shape: bf16[16,32], index: 4, kind: output, shape index: {}]  }
   0x1   :  { %v191_v0 = vld [vmem:[%s261_s1 + $0x38] sm:$0xff]  ;;  %v190_v1 = vld [vmem:[%s261_s1 + $0x30] sm:$0xff]  ;;  %v189_v2 = vld [vmem:[%s261_s1 + $0x28] sm:$0xff] }
   0x2   :  { %89 = vmatpush.bf16.msra.mxu0 %v191_v0  ;;  %v188_v3 = vld [vmem:[%s261_s1 + $0x20] sm:$0xff]  ;;  %v187_v4 = vld [vmem:[%s261_s1 + $0x18] sm:$0xff]  ;;  %v186_v5 = vld [vmem:[%s261_s1 + $0x10] sm:$0xff] }
   0x3   :  { %v185_v6 = vld [vmem:[%s261_s1 + $0x8] sm:$0xff]  ;;  %v184_v7 = vld [vmem:[%s261_s1] sm:$0xff] }
   0x4   :  { %v183_v8 = vld [vmem:[%s263_s0] sm:$0xff] }
   0x5   :  { %v193_v10 = vld [vmem:[%s264_s3] sm:$0xff]  }
   0x6   :  { %90 = vmatpush.bf16.msra.mxu0 %v190_v1  ;;  %v196_v11 = vld [vmem:[%s262_s2] ss:$0 sm:$0xff]  ;;  %v194_v12 = vunpack.c.l.bf16 %v193_v10  ;;  %v195_v18 = vunpack.c.h.bf16 %v193_v10 }
   0xa   :  { %91 = vmatpush.bf16.msra.mxu0 %v189_v2 }
   0xe   :  { %92 = vmatpush.bf16.msra.mxu0 %v188_v3 }
  0x12   :  { %93 = vmatpush.bf16.msra.mxu0 %v187_v4 }
  0x16   :  { %94 = vmatpush.bf16.msra.mxu0 %v186_v5 }
  0x1a   :  { %95 = vmatpush.bf16.msra.mxu0 %v185_v6 }
  0x1e   :  { %96 = vmatpush.bf16.msra.mxu0 %v184_v7 }
  0x21   :  { %97 = vmatmul.bf16.vlgmr.msra.gmra.mxu0 %v183_v8 }
  0x9e   :  { %v98_v9 = vpop.f32.mrf.mxu0 }
  0x9f   :  { %108 = vst.msk [vmem:[#allocation2] sm:$0xff] %vm107_vm0, %v98_v9 }
  0xa6   :  { %v124_v13 = vld [vmem:[#allocation2] sm:$0xff]  ;;  %v100_v14 = vpop.f32.mrf.mxu0 }
  0xa7   :  { %v130_v15 = vadd.f32 %v196_v11, %v124_v13  ;;  %109 = vst.msk [vmem:[#allocation2 + $0x8] sm:$0xff] %vm107_vm0, %v100_v14 }
  0xa9   :  { %v136_v16 = vadd.f32 %v194_v12, %v130_v15 }
  0xab   :  { %v138_v17 = vpack.c.bf16 %v136_v16, %v136_v16 }
  0xad   :  { %141 = vst.msk [vmem:[%s265_s4] sm:$0xf] %vm140_vm1, %v138_v17 }
  0xae   :  { %v125_v19 = vld [vmem:[#allocation2 + $0x8] sm:$0xff] }
  0xaf   :  { %v131_v20 = vadd.f32 %v196_v11, %v125_v19 }
  0xb1   :  { %v137_v21 = vadd.f32 %v195_v18, %v131_v20 }
  0xb3   :  { %v139_v22 = vpack.c.bf16 %v137_v21, %v137_v21 }
  0xb5   :  { %142 = vst.msk [vmem:[%s265_s4 + $0x4] sm:$0xf] %vm140_vm1, %v139_v22 }

// kernel: classification_multimodal_forward.26
= control target key start
LH: loop header
LB: loop body
LE: loop exit
PB: predicated region body
PF: predicated region fallthrough
CT: control target
= control target key end

     0   :  { %vm29_vm0 = vcmask 261120   ;;  %v208_v5 = vmov 32.0   ;;  %vm95_vm6 = vcmask 257024   ;;  %s265_s0 = inlined_call_operand.vmem [shape: bf16[16,32], index: 0, kind: input, shape index: {}]   ;;  %s266_s1 = inlined_call_operand.vmem [shape: f32[1,32], index: 1, kind: input, shape index: {}]   ;;  %s267_s2 = inlined_call_operand.vmem [shape: f32[1,32], index: 2, kind: input, shape index: {}]   ;;  %s268_s4 = inlined_call_operand.vmem [shape: f32[1,128], index: 4, kind: input, shape index: {}]   ;;  %s269_s3 = inlined_call_operand.vmem [shape: bf16[32,128], index: 3, kind: input, shape index: {}]   ;;  %s270_s5 = inlined_call_operand.vmem [shape: bf16[16,128], index: 5, kind: output, shape index: {}]  }
   0x1   :  { %v186_v0 = vld [vmem:[%s265_s0] sm:$0xff]   ;;  %198 = vrcp.f32 %v208_v5  ;;  %v184_v25 = vld [vmem:[%s269_s3 + $0x8] sm:$0xff] }
   0x2   :  { %v187_v1 = vunpack.c.l.bf16 %v186_v0  ;;  %v188_v3 = vunpack.c.h.bf16 %v186_v0  ;;  %135 = vmatpush.bf16.msra.mxu0 %v184_v25  ;;  %v183_v28 = vld [vmem:[%s269_s3] sm:$0xff] }
   0x3   :  { %v195_v38 = vld [vmem:[%s266_s1] ss:$0 sm:$0xff] }
   0x4   :  { %v30_v2 = vsel %vm29_vm0, %v187_v1, 0.0  ;;  %v33_v4 = vsel %vm29_vm0, %v188_v3, 0.0  ;;  %v196_v41 = vld [vmem:[%s267_s2] ss:$0 sm:$0xff] }
   0x5   :  { %31 = vadd.xlane.f32.xlu0 %v30_v2  ;;  %v197_v55 = vld [vmem:[%s268_s4] ss:$0 sm:$0xff] }
   0x6   :  { %136 = vmatpush.bf16.msra.mxu0 %v183_v28 }
   0x7   :  { %v199_v6 = vpop.eup %198 }
   0x8   :  { %v37_v7 = vmul.f32 32.0, %v199_v6  ;;  %vm41_vm1 = vweird.f32 %v199_v6 }
   0xa   :  { %v38_v8 = vsub.f32 1.0, %v37_v7 }
   0xc   :  { %v39_v9 = vmul.f32 %v199_v6, %v38_v8 }
   0xd   :  { %34 = vadd.xlane.f32.xlu0 %v33_v4 }
   0xe   :  { %v40_v10 = vadd.f32 %v199_v6, %v39_v9 }
  0x10   :  { %v42_v11 = vsel %vm41_vm1, %v199_v6, %v40_v10 }
  0x78   :  { %v32_v12 = vpop.xlane.xlu0 %31 }
  0x79   :  { %v43_v13 = vmul.f32 %v42_v11, %v32_v12 }
  0x7b   :  { %v45_v14 = vsub.f32 %v187_v1, %v43_v13 }
  0x7d   :  { %v47_v15 = vmul.f32 %v45_v14, %v45_v14 }
  0x7f   :  { %v49_v16 = vsel %vm29_vm0, %v47_v15, 0.0 }
  0x80   :  { %50 = vadd.xlane.f32.xlu1 %v49_v16  ;;  %v35_v17 = vpop.xlane.xlu0 %34 }
  0x81   :  { %v44_v18 = vmul.f32 %v42_v11, %v35_v17 }
  0x83   :  { %v46_v19 = vsub.f32 %v188_v3, %v44_v18 }
  0x85   :  { %v48_v20 = vmul.f32 %v46_v19, %v46_v19 }
  0x87   :  { %v52_v21 = vsel %vm29_vm0, %v48_v20, 0.0 }
  0x88   :  { %53 = vadd.xlane.f32.xlu1 %v52_v21 }
  0xf3   :  { %v51_v22 = vpop.xlane.xlu1 %50 }
  0xf4   :  { %v55_v23 = vmul.f32 %v51_v22, %v42_v11 }
  0xf6   :  { %v57_v24 = vadd.f32 1e-06, %v55_v23 }
  0xf8   :  { %200 = vrsqrt.f32 %v57_v24  ;;  %vm65_vm3 = vweird.f32 %v57_v24 }
  0xfb   :  { %v54_v26 = vpop.xlane.xlu1 %53 }
  0xfc   :  { %v56_v27 = vmul.f32 %v54_v26, %v42_v11 }
  0xfe   :  { %v201_v29 = vpop.eup %200  ;;  %v58_v30 = vadd.f32 1e-06, %v56_v27 }
  0xff   :  { %v60_v31 = vmul.f32 %v201_v29, %v57_v24  ;;  %vm66_vm2 = vweird.f32 %v201_v29 }
 0x100   :  { %202 = vrsqrt.f32 %v58_v30  ;;  %vm67_vm4 = vmor %vm65_vm3, %vm66_vm2  ;;  %vm75_vm7 = vweird.f32 %v58_v30 }
 0x101   :  { %v61_v32 = vmul.f32 %v201_v29, %v60_v31 }
 0x103   :  { %v62_v33 = vmul.f32 0.5, %v61_v32 }
 0x105   :  { %v63_v34 = vsub.f32 1.5, %v62_v33 }
 0x106   :  { %v203_v35 = vpop.eup %202 }
 0x107   :  { %v64_v36 = vmul.f32 %v201_v29, %v63_v34  ;;  %v70_v37 = vmul.f32 %v203_v35, %v58_v30  ;;  %vm76_vm5 = vweird.f32 %v203_v35 }
 0x108   :  { %vm77_vm8 = vmor %vm75_vm7, %vm76_vm5 }
 0x109   :  { %v68_v39 = vsel %vm67_vm4, %v201_v29, %v64_v36  ;;  %v71_v40 = vmul.f32 %v203_v35, %v70_v37 }
 0x10a   :  { %v79_v42 = vmul.f32 %v68_v39, %v45_v14 }
 0x10b   :  { %v72_v43 = vmul.f32 0.5, %v71_v40 }
 0x10c   :  { %v85_v44 = vmul.f32 %v195_v38, %v79_v42 }
 0x10d   :  { %v73_v45 = vsub.f32 1.5, %v72_v43 }
 0x10e   :  { %v91_v46 = vadd.f32 %v196_v41, %v85_v44 }
 0x10f   :  { %v74_v47 = vmul.f32 %v203_v35, %v73_v45 }
 0x110   :  { %v93_v48 = vpack.c.bf16 %v91_v46, %v91_v46 }
 0x111   :  { %v78_v49 = vsel %vm77_vm8, %v203_v35, %v74_v47 }
 0x112   :  { %96 = vst.msk [vmem:[#allocation2] sm:$0xf] %vm95_vm6, %v93_v48  ;;  %v80_v50 = vmul.f32 %v78_v49, %v46_v19 }
 0x114   :  { %v86_v51 = vmul.f32 %v195_v38, %v80_v50 }
 0x116   :  { %v92_v52 = vadd.f32 %v196_v41, %v86_v51 }
 0x118   :  { %v94_v53 = vpack.c.bf16 %v92_v52, %v92_v52 }
 0x11a   :  { %97 = vst.msk [vmem:[#allocation2 + $0x4] sm:$0xf] %vm95_vm6, %v94_v53 }
 0x121   :  { %v182_v54 = vld [vmem:[#allocation2] sm:$0xff] }
 0x122   :  { %181 = vmatmul.msk.bf16.vlgmr.msra.gmra.mxu0 %vm29_vm0, %v182_v54 }
 0x19f   :  { %v138_v56 = vpop.f32.mrf.mxu0 }
 0x1a0   :  { %v139_v57 = vadd.f32 %v197_v55, %v138_v56 }
 0x1a2   :  { %v145_v58 = vmul.f32 0.044715, %v139_v57  ;;  %v143_v9 = vmul.f32 0.5, %v139_v57 }
 0x1a4   :  { %v147_v59 = vmul.f32 %v145_v58, %v139_v57 }
 0x1a6   :  { %v149_v60 = vmul.f32 %v147_v59, %v139_v57 }
 0x1a7   :  { %v140_v61 = vpop.f32.mrf.mxu0 }
 0x1a8   :  { %v151_v62 = vadd.f32 %v149_v60, %v139_v57  ;;  %v141_v63 = vadd.f32 %v197_v55, %v140_v61 }
 0x1aa   :  { %v146_v0 = vmul.f32 0.044715, %v141_v63  ;;  %v153_v1 = vmul.f32 0.7978846, %v151_v62  ;;  %v144_v10 = vmul.f32 0.5, %v141_v63 }
 0x1ac   :  { %v148_v2 = vmul.f32 %v146_v0, %v141_v63  ;;  %204 = vtanh.f32 %v153_v1 }
 0x1ae   :  { %v150_v3 = vmul.f32 %v148_v2, %v141_v63 }
 0x1b0   :  { %v152_v4 = vadd.f32 %v150_v3, %v141_v63 }
 0x1b2   :  { %v154_v5 = vmul.f32 0.7978846, %v152_v4  ;;  %v205_v6 = vpop.eup %204 }
 0x1b3   :  { %v157_v7 = vadd.f32 1.0, %v205_v6 }
 0x1b4   :  { %206 = vtanh.f32 %v154_v5 }
 0x1b5   :  { %v159_v12 = vmul.f32 %v157_v7, %v143_v9 }
 0x1ba   :  { %v207_v8 = vpop.eup %206 }
 0x1bb   :  { %v158_v11 = vadd.f32 1.0, %v207_v8 }
 0x1bd   :  { %v160_v13 = vmul.f32 %v158_v11, %v144_v10 }
 0x1bf   :  { %v192_v14 = vpack.c.bf16 %v160_v13, %v159_v12 }
 0x1c1   :  { %193 = vst [vmem:[%s270_s5] sm:$0xff] %v192_v14  }

</bundles_post_ra>
